<compile_context>
chip_gen: v7x
topology: tpu7x:2x2x1
jax: 0.10.0
libtpu: 0.0.40
codegen_flags: <defaults>
</compile_context>

<pallas_src>
import jax
import jax.numpy as jnp
from jax.experimental import pallas as pl
from jax.experimental.pallas import tpu as pltpu


def _lstm_otm_kernel(x_ref, mask_ref, wih_ref, whh_ref, b_ref, wfc_ref, bfc_ref,
                     pred_ref,
                     gx_ref, hall_ref, h_ref, c_ref):
    """Single-invocation kernel (grid=(1,)), everything VMEM-resident.

      x_ref    : ((T+1)*B, E)  bf16  -- [encoder_out ; emb_t=0 ; ... ; emb_t=T-1]
      mask_ref : (T*B, 1)      f32   -- 1.0 where decode_lengths[b] > t (rows t-major)
      wih_ref  : (E, 4H) bf16, whh_ref : (H, 4H) bf16, b_ref : (1, 4H) f32
      wfc_ref  : (H, V)  bf16, bfc_ref : (1, V)  f32
      pred_ref : (T*B, V) f32  -- output logits, exactly zero where inactive
      gx_ref   : ((T+1)*B, 4H) f32 scratch (hoisted x-projection + bias)
      hall_ref : (T*B, H) bf16 scratch (per-step hidden states for deferred fc)
      h_ref/c_ref : (B, H) f32 scratch carries
    """
    B, H = h_ref.shape
    TB = hall_ref.shape[0]
    T = TB // B

    # ---- Prologue: ONE batched input projection on the MXU (M = (T+1)*B),
    # covering the t=0 encoder_out cell step and every embedding timestep.
    gx_ref[...] = (
        jnp.dot(x_ref[...], wih_ref[...], preferred_element_type=jnp.float32)
        + b_ref[...])

    def gate_math(gates, c_prev):
        # Gate nonlinearities / cell update stay in f32 (v5e VPU/EUP have no bf16 path).
        i = jax.nn.sigmoid(gates[:, 0 * H:1 * H])
        f = jax.nn.sigmoid(gates[:, 1 * H:2 * H])
        g = jnp.tanh(gates[:, 2 * H:3 * H])
        o = jax.nn.sigmoid(gates[:, 3 * H:4 * H])
        c_new = f * c_prev + i * g
        h_new = o * jnp.tanh(c_new)
        return h_new, c_new

    # ---- Initial LSTMCell step on encoder_out from zero state (h0 = 0 => h0@W_hh = 0).
    h0, c0 = gate_math(gx_ref[pl.ds(0, B), :], jnp.zeros((B, H), jnp.float32))
    h_ref[...] = h0
    c_ref[...] = c0

    # ---- Recurrence: only h @ W_hh^T remains inside the sequential loop.
    def step(t, carry):
        h = h_ref[...]
        c = c_ref[...]
        gates = gx_ref[pl.ds((t + 1) * B, B), :] + jnp.dot(
            h.astype(jnp.bfloat16), whh_ref[...],
            preferred_element_type=jnp.float32)
        h_new, c_new = gate_math(gates, c)
        # Rows are pre-sorted by descending length, so the per-row mask reproduces
        # the prefix slicing h[:batch_size_t] of the reference exactly.
        active = mask_ref[pl.ds(t * B, B), :] > 0.5            # (B, 1)
        h_ref[...] = jnp.where(active, h_new, h)
        c_ref[...] = jnp.where(active, c_new, c)
        hall_ref[pl.ds(t * B, B), :] = h_new.astype(jnp.bfloat16)
        return carry

    jax.lax.fori_loop(0, T, step, 0, unroll=True)

    # ---- Epilogue: ONE batched fc matmul over all timesteps (M = T*B), masked store.
    # TODO(synk): nn.Dropout(p=0.5) is treated as eval-mode identity (no stochastic mask).
    # TODO(synk): for realistic (large) vocab sizes, tile this matmul over V (and split
    # across v7x TensorCores); not needed at these shapes.
    preds = (jnp.dot(hall_ref[...], wfc_ref[...],
                     preferred_element_type=jnp.float32) + bfc_ref[...])
    pred_ref[...] = jnp.where(mask_ref[...] > 0.5, preds, 0.0)


def lstm_otm_forward(params, encoder_out, encoded_captions, caption_lengths):
    B, E = encoder_out.shape
    H = params["w_hh_t"].shape[0]
    V = params["w_fc_t"].shape[1]

    # --- glue: sort by caption length (descending), gather embeddings -------
    lengths = caption_lengths[:, 0]
    sort_ind = jnp.argsort(-lengths)                 # descending, stable
    lengths_sorted = lengths[sort_ind]
    encoder_out_s = encoder_out[sort_ind]
    captions_s = encoded_captions[sort_ind]
    decode_lengths = (lengths_sorted - 1).astype(jnp.int32)
    T = int(jnp.max(decode_lengths))                 # static (concrete inputs)

    embeddings = params["embedding"][captions_s][:, :T, :]      # (B, T, E)
    emb_tm = jnp.transpose(embeddings, (1, 0, 2))               # (T, B, E)
    x_tm = jnp.concatenate([encoder_out_s[None], emb_tm], 0)    # (T+1, B, E)
    x_flat = x_tm.reshape((T + 1) * B, E).astype(jnp.bfloat16)  # bf16 MXU operands

    mask = (decode_lengths[None, :] > jnp.arange(T)[:, None]).astype(jnp.float32)
    mask_flat = mask.reshape(T * B, 1)                          # (T*B, 1)

    wih = params["w_ih_t"].astype(jnp.bfloat16)
    whh = params["w_hh_t"].astype(jnp.bfloat16)
    wfc = params["w_fc_t"].astype(jnp.bfloat16)
    bias = params["bias"]                                       # (1, 4H) f32
    bfc = params["b_fc"]                                        # (1, V)  f32

    # --- hot path: one Pallas invocation, VMEM-resident, fori_loop recurrence ---
    pred_flat = pl.pallas_call(
        _lstm_otm_kernel,
        out_shape=jax.ShapeDtypeStruct((T * B, V), jnp.float32),
        grid_spec=pltpu.PrefetchScalarGridSpec(
            num_scalar_prefetch=0,
            grid=(1,),
            in_specs=[
                pl.BlockSpec(((T + 1) * B, E), lambda i: (0, 0)),   # x (enc + emb)
                pl.BlockSpec((T * B, 1), lambda i: (0, 0)),         # active mask
                pl.BlockSpec((E, 4 * H), lambda i: (0, 0)),         # W_ih^T
                pl.BlockSpec((H, 4 * H), lambda i: (0, 0)),         # W_hh^T
                pl.BlockSpec((1, 4 * H), lambda i: (0, 0)),         # b_ih + b_hh
                pl.BlockSpec((H, V), lambda i: (0, 0)),             # W_fc^T
                pl.BlockSpec((1, V), lambda i: (0, 0)),             # b_fc
            ],
            out_specs=pl.BlockSpec((T * B, V), lambda i: (0, 0)),
            scratch_shapes=[
                pltpu.VMEM(((T + 1) * B, 4 * H), jnp.float32),      # hoisted x-proj
                pltpu.VMEM((T * B, H), jnp.bfloat16),               # all h_t
                pltpu.VMEM((B, H), jnp.float32),                    # h carry
                pltpu.VMEM((B, H), jnp.float32),                    # c carry
            ],
        ),
        compiler_params=pltpu.CompilerParams(
            dimension_semantics=("arbitrary",)),                    # single step
    )(x_flat, mask_flat, wih, whh, bias, wfc, bfc)

    predictions = pred_flat.reshape(T, B, V).transpose(1, 0, 2)     # (B, T, V)
    return predictions, decode_lengths, sort_ind


def init_params(key, encoder_dim, embed_dim, decoder_dim, vocab_size):
    # The reference module feeds embed_dim-sized embeddings into an
    # LSTMCell(encoder_dim, decoder_dim), so embed_dim must equal encoder_dim.
    assert embed_dim == encoder_dim
    ks = jax.random.split(key, 6)
    k = 1.0 / jnp.sqrt(decoder_dim)
    embedding = jax.random.normal(ks[0], (vocab_size, embed_dim), jnp.float32)
    w_ih = jax.random.uniform(ks[1], (4 * decoder_dim, encoder_dim), jnp.float32, -k, k)
    w_hh = jax.random.uniform(ks[2], (4 * decoder_dim, decoder_dim), jnp.float32, -k, k)
    b_ih = jax.random.uniform(ks[3], (4 * decoder_dim,), jnp.float32, -k, k)
    b_hh = jax.random.uniform(ks[4], (4 * decoder_dim,), jnp.float32, -k, k)
    w_fc = jax.random.uniform(ks[5], (vocab_size, decoder_dim), jnp.float32, -0.1, 0.1)
    return {
        "embedding": embedding,
        "w_ih_t": jnp.asarray(w_ih.T),
        "w_hh_t": jnp.asarray(w_hh.T),
        "bias": (b_ih + b_hh).reshape(1, -1),
        "w_fc_t": jnp.asarray(w_fc.T),
        "b_fc": jnp.zeros((1, vocab_size), jnp.float32),   # fc.bias.fill_(0)
    }


if __name__ == "__main__":
    B = 8
    encoder_dim = embed_dim = 128
    decoder_dim = 128
    vocab_size = 256
    max_cap_len = 9

    key = jax.random.PRNGKey(0)
    k_p, k_e, k_c, k_l = jax.random.split(key, 4)
    params = init_params(k_p, encoder_dim, embed_dim, decoder_dim, vocab_size)

    encoder_out = jax.random.normal(k_e, (B, encoder_dim), jnp.float32)
    encoded_captions = jax.random.randint(k_c, (B, max_cap_len), 0, vocab_size,
                                          dtype=jnp.int32)
    caption_lengths = jax.random.randint(k_l, (B, 1), 2, max_cap_len + 1,
                                         dtype=jnp.int32)

    preds, decode_lengths, sort_ind = lstm_otm_forward(
        params, encoder_out, encoded_captions, caption_lengths)
    jax.block_until_ready(preds)
    assert preds.shape == (B, int(jnp.max(caption_lengths[:, 0] - 1)), vocab_size)
    print("KERNEL_OK")
</pallas_src>

<mosaic_0001>
module attributes {stable_mosaic.version = 11 : i64} {
  func.func @_lstm_otm_kernel(%arg0: i32, %arg1: memref<72x128xbf16, #tpu.memory_space<vmem>>, %arg2: memref<64x1xf32, #tpu.memory_space<vmem>>, %arg3: memref<128x512xbf16, #tpu.memory_space<vmem>>, %arg4: memref<128x512xbf16, #tpu.memory_space<vmem>>, %arg5: memref<1x512xf32, #tpu.memory_space<vmem>>, %arg6: memref<128x256xbf16, #tpu.memory_space<vmem>>, %arg7: memref<1x256xf32, #tpu.memory_space<vmem>>, %arg8: memref<64x256xf32, #tpu.memory_space<vmem>>, %arg9: memref<72x512xf32, #tpu.memory_space<vmem>>, %arg10: memref<64x128xbf16, #tpu.memory_space<vmem>>, %arg11: memref<8x128xf32, #tpu.memory_space<vmem>>, %arg12: memref<8x128xf32, #tpu.memory_space<vmem>>) attributes {dimension_semantics = [#tpu.dimension_semantics<arbitrary>], iteration_bounds = array<i64: 1>, scalar_prefetch = 0 : i64, scratch_operands = 4 : i64, tpu.core_type = #tpu.core_type<tc>, window_params = [{pipeline_mode = #tpu.pipeline_mode<synchronous>, transform_indices = @transform_0, window_bounds = array<i64: 72, 128>}, {pipeline_mode = #tpu.pipeline_mode<synchronous>, transform_indices = @transform_1, window_bounds = array<i64: 64, 1>}, {pipeline_mode = #tpu.pipeline_mode<synchronous>, transform_indices = @transform_2, window_bounds = array<i64: 128, 512>}, {pipeline_mode = #tpu.pipeline_mode<synchronous>, transform_indices = @transform_3, window_bounds = array<i64: 128, 512>}, {pipeline_mode = #tpu.pipeline_mode<synchronous>, transform_indices = @transform_4, window_bounds = array<i64: 1, 512>}, {pipeline_mode = #tpu.pipeline_mode<synchronous>, transform_indices = @transform_5, window_bounds = array<i64: 128, 256>}, {pipeline_mode = #tpu.pipeline_mode<synchronous>, transform_indices = @transform_6, window_bounds = array<i64: 1, 256>}, {pipeline_mode = #tpu.pipeline_mode<synchronous>, transform_indices = @transform_7, window_bounds = array<i64: 64, 256>}]} {
    %c0 = arith.constant 0 : index
    %c0_0 = arith.constant 0 : index
    %0 = vector.load %arg1[%c0, %c0_0] : memref<72x128xbf16, #tpu.memory_space<vmem>>, vector<72x128xbf16>
    %c0_1 = arith.constant 0 : index
    %c0_2 = arith.constant 0 : index
    %1 = vector.load %arg3[%c0_1, %c0_2] : memref<128x512xbf16, #tpu.memory_space<vmem>>, vector<128x512xbf16>
    %cst = arith.constant dense<0.000000e+00> : vector<72x512xf32>
    %2 = tpu.matmul %0, %1, %cst {dimension_numbers = #tpu.dot_dimension_numbers<[1], [0], [0], [1], [0, 0, 1, 1], [], []>} : vector<72x128xbf16>, vector<128x512xbf16>, vector<72x512xf32> -> vector<72x512xf32>
    %c0_3 = arith.constant 0 : index
    %c0_4 = arith.constant 0 : index
    %3 = vector.load %arg5[%c0_3, %c0_4] : memref<1x512xf32, #tpu.memory_space<vmem>>, vector<1x512xf32>
    %4 = vector.broadcast %3 : vector<1x512xf32> to vector<72x512xf32>
    %5 = arith.addf %2, %4 : vector<72x512xf32>
    %c0_5 = arith.constant 0 : index
    %c0_6 = arith.constant 0 : index
    %6 = vector.load %arg9[%c0_5, %c0_6] : memref<72x512xf32, #tpu.memory_space<vmem>>, vector<72x512xf32>
    tpu.vector_store %arg9[%c0_5, %c0_6], %5 {strides = array<i32>} : memref<72x512xf32, #tpu.memory_space<vmem>>, vector<72x512xf32>,
    %c0_7 = arith.constant 0 : index
    %c0_8 = arith.constant 0 : index
    %7 = vector.load %arg9[%c0_7, %c0_8] : memref<72x512xf32, #tpu.memory_space<vmem>>, vector<8x512xf32>
    %cst_9 = arith.constant 0.000000e+00 : f32
    %8 = vector.broadcast %cst_9 : f32 to vector<8x128xf32>
    %9 = vector.extract_strided_slice %7 {offsets = [0, 0], sizes = [8, 128], strides = [1, 1]} : vector<8x512xf32> to vector<8x128xf32>
    %10 = arith.negf %9 : vector<8x128xf32>
    %11 = math.exp %10 : vector<8x128xf32>
    %cst_10 = arith.constant 1.000000e+00 : f32
    %12 = vector.broadcast %cst_10 : f32 to vector<8x128xf32>
    %13 = arith.addf %12, %11 : vector<8x128xf32>
    %14 = arith.divf %12, %13 : vector<8x128xf32>
    %15 = vector.extract_strided_slice %7 {offsets = [0, 128], sizes = [8, 128], strides = [1, 1]} : vector<8x512xf32> to vector<8x128xf32>
    %16 = arith.negf %15 : vector<8x128xf32>
    %17 = math.exp %16 : vector<8x128xf32>
    %cst_11 = arith.constant 1.000000e+00 : f32
    %18 = vector.broadcast %cst_11 : f32 to vector<8x128xf32>
    %19 = arith.addf %18, %17 : vector<8x128xf32>
    %20 = arith.divf %18, %19 : vector<8x128xf32>
    %21 = vector.extract_strided_slice %7 {offsets = [0, 256], sizes = [8, 128], strides = [1, 1]} : vector<8x512xf32> to vector<8x128xf32>
    %22 = math.tanh %21 : vector<8x128xf32>
    %23 = vector.extract_strided_slice %7 {offsets = [0, 384], sizes = [8, 128], strides = [1, 1]} : vector<8x512xf32> to vector<8x128xf32>
    %24 = arith.negf %23 : vector<8x128xf32>
    %25 = math.exp %24 : vector<8x128xf32>
    %cst_12 = arith.constant 1.000000e+00 : f32
    %26 = vector.broadcast %cst_12 : f32 to vector<8x128xf32>
    %27 = arith.addf %26, %25 : vector<8x128xf32>
    %28 = arith.divf %26, %27 : vector<8x128xf32>
    %29 = arith.mulf %20, %8 : vector<8x128xf32>
    %30 = arith.mulf %14, %22 : vector<8x128xf32>
    %31 = arith.addf %29, %30 : vector<8x128xf32>
    %32 = math.tanh %31 : vector<8x128xf32>
    %33 = arith.mulf %28, %32 : vector<8x128xf32>
    %c0_13 = arith.constant 0 : index
    %c0_14 = arith.constant 0 : index
    %34 = vector.load %arg11[%c0_13, %c0_14] : memref<8x128xf32, #tpu.memory_space<vmem>>, vector<8x128xf32>
    tpu.vector_store %arg11[%c0_13, %c0_14], %33 {strides = array<i32>} : memref<8x128xf32, #tpu.memory_space<vmem>>, vector<8x128xf32>,
    %c0_15 = arith.constant 0 : index
    %c0_16 = arith.constant 0 : index
    %35 = vector.load %arg12[%c0_15, %c0_16] : memref<8x128xf32, #tpu.memory_space<vmem>>, vector<8x128xf32>
    tpu.vector_store %arg12[%c0_15, %c0_16], %31 {strides = array<i32>} : memref<8x128xf32, #tpu.memory_space<vmem>>, vector<8x128xf32>,
    %c0_i32 = arith.constant 0 : i32
    %c0_17 = arith.constant 0 : index
    %c0_18 = arith.constant 0 : index
    %36 = vector.load %arg11[%c0_17, %c0_18] : memref<8x128xf32, #tpu.memory_space<vmem>>, vector<8x128xf32>
    %c0_19 = arith.constant 0 : index
    %c0_20 = arith.constant 0 : index
    %37 = vector.load %arg12[%c0_19, %c0_20] : memref<8x128xf32, #tpu.memory_space<vmem>>, vector<8x128xf32>
    %c1_i32 = arith.constant 1 : i32
    %38 = arith.addi %c0_i32, %c1_i32 : i32
    %c8_i32 = arith.constant 8 : i32
    %39 = arith.muli %38, %c8_i32 : i32
    %40 = arith.index_cast %39 : i32 to index
    %c0_21 = arith.constant 0 : index
    %41 = vector.load %arg9[%40, %c0_21] : memref<72x512xf32, #tpu.memory_space<vmem>>, vector<8x512xf32>
    %42 = arith.truncf %36 : vector<8x128xf32> to vector<8x128xbf16>
    %c0_22 = arith.constant 0 : index
    %c0_23 = arith.constant 0 : index
    %43 = vector.load %arg4[%c0_22, %c0_23] : memref<128x512xbf16, #tpu.memory_space<vmem>>, vector<128x512xbf16>
    %cst_24 = arith.constant dense<0.000000e+00> : vector<8x512xf32>
    %44 = tpu.matmul %42, %43, %cst_24 {dimension_numbers = #tpu.dot_dimension_numbers<[1], [0], [0], [1], [0, 0, 1, 1], [], []>} : vector<8x128xbf16>, vector<128x512xbf16>, vector<8x512xf32> -> vector<8x512xf32>
    %45 = arith.addf %41, %44 : vector<8x512xf32>
    %46 = vector.extract_strided_slice %45 {offsets = [0, 0], sizes = [8, 128], strides = [1, 1]} : vector<8x512xf32> to vector<8x128xf32>
    %47 = arith.negf %46 : vector<8x128xf32>
    %48 = math.exp %47 : vector<8x128xf32>
    %cst_25 = arith.constant 1.000000e+00 : f32
    %49 = vector.broadcast %cst_25 : f32 to vector<8x128xf32>
    %50 = arith.addf %49, %48 : vector<8x128xf32>
    %51 = arith.divf %49, %50 : vector<8x128xf32>
    %52 = vector.extract_strided_slice %45 {offsets = [0, 128], sizes = [8, 128], strides = [1, 1]} : vector<8x512xf32> to vector<8x128xf32>
    %53 = arith.negf %52 : vector<8x128xf32>
    %54 = math.exp %53 : vector<8x128xf32>
    %cst_26 = arith.constant 1.000000e+00 : f32
    %55 = vector.broadcast %cst_26 : f32 to vector<8x128xf32>
    %56 = arith.addf %55, %54 : vector<8x128xf32>
    %57 = arith.divf %55, %56 : vector<8x128xf32>
    %58 = vector.extract_strided_slice %45 {offsets = [0, 256], sizes = [8, 128], strides = [1, 1]} : vector<8x512xf32> to vector<8x128xf32>
    %59 = math.tanh %58 : vector<8x128xf32>
    %60 = vector.extract_strided_slice %45 {offsets = [0, 384], sizes = [8, 128], strides = [1, 1]} : vector<8x512xf32> to vector<8x128xf32>
    %61 = arith.negf %60 : vector<8x128xf32>
    %62 = math.exp %61 : vector<8x128xf32>
    %cst_27 = arith.constant 1.000000e+00 : f32
    %63 = vector.broadcast %cst_27 : f32 to vector<8x128xf32>
    %64 = arith.addf %63, %62 : vector<8x128xf32>
    %65 = arith.divf %63, %64 : vector<8x128xf32>
    %66 = arith.mulf %57, %37 : vector<8x128xf32>
    %67 = arith.mulf %51, %59 : vector<8x128xf32>
    %68 = arith.addf %66, %67 : vector<8x128xf32>
    %69 = math.tanh %68 : vector<8x128xf32>
    %70 = arith.mulf %65, %69 : vector<8x128xf32>
    %c8_i32_28 = arith.constant 8 : i32
    %71 = arith.muli %c0_i32, %c8_i32_28 : i32
    %72 = arith.index_cast %71 : i32 to index
    %c0_29 = arith.constant 0 : index
    %73 = vector.load %arg2[%72, %c0_29] : memref<64x1xf32, #tpu.memory_space<vmem>>, vector<8x1xf32>
    %cst_30 = arith.constant 5.000000e-01 : f32
    %74 = vector.broadcast %cst_30 : f32 to vector<8x1xf32>
    %75 = arith.cmpf ogt, %73, %74 : vector<8x1xf32>
    %76 = vector.shape_cast %75 : vector<8x1xi1> to vector<8x1xi1>
    %77 = vector.broadcast %76 : vector<8x1xi1> to vector<8x128xi1>
    %78 = arith.select %77, %70, %36 : vector<8x128xi1>, vector<8x128xf32>
    %c0_31 = arith.constant 0 : index
    %c0_32 = arith.constant 0 : index
    %79 = vector.load %arg11[%c0_31, %c0_32] : memref<8x128xf32, #tpu.memory_space<vmem>>, vector<8x128xf32>
    tpu.vector_store %arg11[%c0_31, %c0_32], %78 {strides = array<i32>} : memref<8x128xf32, #tpu.memory_space<vmem>>, vector<8x128xf32>,
    %80 = vector.shape_cast %75 : vector<8x1xi1> to vector<8x1xi1>
    %81 = vector.broadcast %80 : vector<8x1xi1> to vector<8x128xi1>
    %82 = arith.select %81, %68, %37 : vector<8x128xi1>, vector<8x128xf32>
    %c0_33 = arith.constant 0 : index
    %c0_34 = arith.constant 0 : index
    %83 = vector.load %arg12[%c0_33, %c0_34] : memref<8x128xf32, #tpu.memory_space<vmem>>, vector<8x128xf32>
    tpu.vector_store %arg12[%c0_33, %c0_34], %82 {strides = array<i32>} : memref<8x128xf32, #tpu.memory_space<vmem>>, vector<8x128xf32>,
    %84 = arith.truncf %70 : vector<8x128xf32> to vector<8x128xbf16>
    %c8_i32_35 = arith.constant 8 : i32
    %85 = arith.muli %c0_i32, %c8_i32_35 : i32
    %86 = arith.index_cast %85 : i32 to index
    %c0_36 = arith.constant 0 : index
    %87 = vector.load %arg10[%86, %c0_36] : memref<64x128xbf16, #tpu.memory_space<vmem>>, vector<8x128xbf16>
    tpu.vector_store %arg10[%86, %c0_36], %84 {strides = array<i32>} : memref<64x128xbf16, #tpu.memory_space<vmem>>, vector<8x128xbf16>,
    %c1_i32_37 = arith.constant 1 : i32
    %c0_38 = arith.constant 0 : index
    %c0_39 = arith.constant 0 : index
    %88 = vector.load %arg11[%c0_38, %c0_39] : memref<8x128xf32, #tpu.memory_space<vmem>>, vector<8x128xf32>
    %c0_40 = arith.constant 0 : index
    %c0_41 = arith.constant 0 : index
    %89 = vector.load %arg12[%c0_40, %c0_41] : memref<8x128xf32, #tpu.memory_space<vmem>>, vector<8x128xf32>
    %c1_i32_42 = arith.constant 1 : i32
    %90 = arith.addi %c1_i32_37, %c1_i32_42 : i32
    %c8_i32_43 = arith.constant 8 : i32
    %91 = arith.muli %90, %c8_i32_43 : i32
    %92 = arith.index_cast %91 : i32 to index
    %c0_44 = arith.constant 0 : index
    %93 = vector.load %arg9[%92, %c0_44] : memref<72x512xf32, #tpu.memory_space<vmem>>, vector<8x512xf32>
    %94 = arith.truncf %88 : vector<8x128xf32> to vector<8x128xbf16>
    %c0_45 = arith.constant 0 : index
    %c0_46 = arith.constant 0 : index
    %95 = vector.load %arg4[%c0_45, %c0_46] : memref<128x512xbf16, #tpu.memory_space<vmem>>, vector<128x512xbf16>
    %cst_47 = arith.constant dense<0.000000e+00> : vector<8x512xf32>
    %96 = tpu.matmul %94, %95, %cst_47 {dimension_numbers = #tpu.dot_dimension_numbers<[1], [0], [0], [1], [0, 0, 1, 1], [], []>} : vector<8x128xbf16>, vector<128x512xbf16>, vector<8x512xf32> -> vector<8x512xf32>
    %97 = arith.addf %93, %96 : vector<8x512xf32>
    %98 = vector.extract_strided_slice %97 {offsets = [0, 0], sizes = [8, 128], strides = [1, 1]} : vector<8x512xf32> to vector<8x128xf32>
    %99 = arith.negf %98 : vector<8x128xf32>
    %100 = math.exp %99 : vector<8x128xf32>
    %cst_48 = arith.constant 1.000000e+00 : f32
    %101 = vector.broadcast %cst_48 : f32 to vector<8x128xf32>
    %102 = arith.addf %101, %100 : vector<8x128xf32>
    %103 = arith.divf %101, %102 : vector<8x128xf32>
    %104 = vector.extract_strided_slice %97 {offsets = [0, 128], sizes = [8, 128], strides = [1, 1]} : vector<8x512xf32> to vector<8x128xf32>
    %105 = arith.negf %104 : vector<8x128xf32>
    %106 = math.exp %105 : vector<8x128xf32>
    %cst_49 = arith.constant 1.000000e+00 : f32
    %107 = vector.broadcast %cst_49 : f32 to vector<8x128xf32>
    %108 = arith.addf %107, %106 : vector<8x128xf32>
    %109 = arith.divf %107, %108 : vector<8x128xf32>
    %110 = vector.extract_strided_slice %97 {offsets = [0, 256], sizes = [8, 128], strides = [1, 1]} : vector<8x512xf32> to vector<8x128xf32>
    %111 = math.tanh %110 : vector<8x128xf32>
    %112 = vector.extract_strided_slice %97 {offsets = [0, 384], sizes = [8, 128], strides = [1, 1]} : vector<8x512xf32> to vector<8x128xf32>
    %113 = arith.negf %112 : vector<8x128xf32>
    %114 = math.exp %113 : vector<8x128xf32>
    %cst_50 = arith.constant 1.000000e+00 : f32
    %115 = vector.broadcast %cst_50 : f32 to vector<8x128xf32>
    %116 = arith.addf %115, %114 : vector<8x128xf32>
    %117 = arith.divf %115, %116 : vector<8x128xf32>
    %118 = arith.mulf %109, %89 : vector<8x128xf32>
    %119 = arith.mulf %103, %111 : vector<8x128xf32>
    %120 = arith.addf %118, %119 : vector<8x128xf32>
    %121 = math.tanh %120 : vector<8x128xf32>
    %122 = arith.mulf %117, %121 : vector<8x128xf32>
    %c8_i32_51 = arith.constant 8 : i32
    %123 = arith.muli %c1_i32_37, %c8_i32_51 : i32
    %124 = arith.index_cast %123 : i32 to index
    %c0_52 = arith.constant 0 : index
    %125 = vector.load %arg2[%124, %c0_52] : memref<64x1xf32, #tpu.memory_space<vmem>>, vector<8x1xf32>
    %cst_53 = arith.constant 5.000000e-01 : f32
    %126 = vector.broadcast %cst_53 : f32 to vector<8x1xf32>
    %127 = arith.cmpf ogt, %125, %126 : vector<8x1xf32>
    %128 = vector.shape_cast %127 : vector<8x1xi1> to vector<8x1xi1>
    %129 = vector.broadcast %128 : vector<8x1xi1> to vector<8x128xi1>
    %130 = arith.select %129, %122, %88 : vector<8x128xi1>, vector<8x128xf32>
    %c0_54 = arith.constant 0 : index
    %c0_55 = arith.constant 0 : index
    %131 = vector.load %arg11[%c0_54, %c0_55] : memref<8x128xf32, #tpu.memory_space<vmem>>, vector<8x128xf32>
    tpu.vector_store %arg11[%c0_54, %c0_55], %130 {strides = array<i32>} : memref<8x128xf32, #tpu.memory_space<vmem>>, vector<8x128xf32>,
    %132 = vector.shape_cast %127 : vector<8x1xi1> to vector<8x1xi1>
    %133 = vector.broadcast %132 : vector<8x1xi1> to vector<8x128xi1>
    %134 = arith.select %133, %120, %89 : vector<8x128xi1>, vector<8x128xf32>
    %c0_56 = arith.constant 0 : index
    %c0_57 = arith.constant 0 : index
    %135 = vector.load %arg12[%c0_56, %c0_57] : memref<8x128xf32, #tpu.memory_space<vmem>>, vector<8x128xf32>
    tpu.vector_store %arg12[%c0_56, %c0_57], %134 {strides = array<i32>} : memref<8x128xf32, #tpu.memory_space<vmem>>, vector<8x128xf32>,
    %136 = arith.truncf %122 : vector<8x128xf32> to vector<8x128xbf16>
    %c8_i32_58 = arith.constant 8 : i32
    %137 = arith.muli %c1_i32_37, %c8_i32_58 : i32
    %138 = arith.index_cast %137 : i32 to index
    %c0_59 = arith.constant 0 : index
    %139 = vector.load %arg10[%138, %c0_59] : memref<64x128xbf16, #tpu.memory_space<vmem>>, vector<8x128xbf16>
    tpu.vector_store %arg10[%138, %c0_59], %136 {strides = array<i32>} : memref<64x128xbf16, #tpu.memory_space<vmem>>, vector<8x128xbf16>,
    %c2_i32 = arith.constant 2 : i32
    %c0_60 = arith.constant 0 : index
    %c0_61 = arith.constant 0 : index
    %140 = vector.load %arg11[%c0_60, %c0_61] : memref<8x128xf32, #tpu.memory_space<vmem>>, vector<8x128xf32>
    %c0_62 = arith.constant 0 : index
    %c0_63 = arith.constant 0 : index
    %141 = vector.load %arg12[%c0_62, %c0_63] : memref<8x128xf32, #tpu.memory_space<vmem>>, vector<8x128xf32>
    %c1_i32_64 = arith.constant 1 : i32
    %142 = arith.addi %c2_i32, %c1_i32_64 : i32
    %c8_i32_65 = arith.constant 8 : i32
    %143 = arith.muli %142, %c8_i32_65 : i32
    %144 = arith.index_cast %143 : i32 to index
    %c0_66 = arith.constant 0 : index
    %145 = vector.load %arg9[%144, %c0_66] : memref<72x512xf32, #tpu.memory_space<vmem>>, vector<8x512xf32>
    %146 = arith.truncf %140 : vector<8x128xf32> to vector<8x128xbf16>
    %c0_67 = arith.constant 0 : index
    %c0_68 = arith.constant 0 : index
    %147 = vector.load %arg4[%c0_67, %c0_68] : memref<128x512xbf16, #tpu.memory_space<vmem>>, vector<128x512xbf16>
    %cst_69 = arith.constant dense<0.000000e+00> : vector<8x512xf32>
    %148 = tpu.matmul %146, %147, %cst_69 {dimension_numbers = #tpu.dot_dimension_numbers<[1], [0], [0], [1], [0, 0, 1, 1], [], []>} : vector<8x128xbf16>, vector<128x512xbf16>, vector<8x512xf32> -> vector<8x512xf32>
    %149 = arith.addf %145, %148 : vector<8x512xf32>
    %150 = vector.extract_strided_slice %149 {offsets = [0, 0], sizes = [8, 128], strides = [1, 1]} : vector<8x512xf32> to vector<8x128xf32>
    %151 = arith.negf %150 : vector<8x128xf32>
    %152 = math.exp %151 : vector<8x128xf32>
    %cst_70 = arith.constant 1.000000e+00 : f32
    %153 = vector.broadcast %cst_70 : f32 to vector<8x128xf32>
    %154 = arith.addf %153, %152 : vector<8x128xf32>
    %155 = arith.divf %153, %154 : vector<8x128xf32>
    %156 = vector.extract_strided_slice %149 {offsets = [0, 128], sizes = [8, 128], strides = [1, 1]} : vector<8x512xf32> to vector<8x128xf32>
    %157 = arith.negf %156 : vector<8x128xf32>
    %158 = math.exp %157 : vector<8x128xf32>
    %cst_71 = arith.constant 1.000000e+00 : f32
    %159 = vector.broadcast %cst_71 : f32 to vector<8x128xf32>
    %160 = arith.addf %159, %158 : vector<8x128xf32>
    %161 = arith.divf %159, %160 : vector<8x128xf32>
    %162 = vector.extract_strided_slice %149 {offsets = [0, 256], sizes = [8, 128], strides = [1, 1]} : vector<8x512xf32> to vector<8x128xf32>
    %163 = math.tanh %162 : vector<8x128xf32>
    %164 = vector.extract_strided_slice %149 {offsets = [0, 384], sizes = [8, 128], strides = [1, 1]} : vector<8x512xf32> to vector<8x128xf32>
    %165 = arith.negf %164 : vector<8x128xf32>
    %166 = math.exp %165 : vector<8x128xf32>
    %cst_72 = arith.constant 1.000000e+00 : f32
    %167 = vector.broadcast %cst_72 : f32 to vector<8x128xf32>
    %168 = arith.addf %167, %166 : vector<8x128xf32>
    %169 = arith.divf %167, %168 : vector<8x128xf32>
    %170 = arith.mulf %161, %141 : vector<8x128xf32>
    %171 = arith.mulf %155, %163 : vector<8x128xf32>
    %172 = arith.addf %170, %171 : vector<8x128xf32>
    %173 = math.tanh %172 : vector<8x128xf32>
    %174 = arith.mulf %169, %173 : vector<8x128xf32>
    %c8_i32_73 = arith.constant 8 : i32
    %175 = arith.muli %c2_i32, %c8_i32_73 : i32
    %176 = arith.index_cast %175 : i32 to index
    %c0_74 = arith.constant 0 : index
    %177 = vector.load %arg2[%176, %c0_74] : memref<64x1xf32, #tpu.memory_space<vmem>>, vector<8x1xf32>
    %cst_75 = arith.constant 5.000000e-01 : f32
    %178 = vector.broadcast %cst_75 : f32 to vector<8x1xf32>
    %179 = arith.cmpf ogt, %177, %178 : vector<8x1xf32>
    %180 = vector.shape_cast %179 : vector<8x1xi1> to vector<8x1xi1>
    %181 = vector.broadcast %180 : vector<8x1xi1> to vector<8x128xi1>
    %182 = arith.select %181, %174, %140 : vector<8x128xi1>, vector<8x128xf32>
    %c0_76 = arith.constant 0 : index
    %c0_77 = arith.constant 0 : index
    %183 = vector.load %arg11[%c0_76, %c0_77] : memref<8x128xf32, #tpu.memory_space<vmem>>, vector<8x128xf32>
    tpu.vector_store %arg11[%c0_76, %c0_77], %182 {strides = array<i32>} : memref<8x128xf32, #tpu.memory_space<vmem>>, vector<8x128xf32>,
    %184 = vector.shape_cast %179 : vector<8x1xi1> to vector<8x1xi1>
    %185 = vector.broadcast %184 : vector<8x1xi1> to vector<8x128xi1>
    %186 = arith.select %185, %172, %141 : vector<8x128xi1>, vector<8x128xf32>
    %c0_78 = arith.constant 0 : index
    %c0_79 = arith.constant 0 : index
    %187 = vector.load %arg12[%c0_78, %c0_79] : memref<8x128xf32, #tpu.memory_space<vmem>>, vector<8x128xf32>
    tpu.vector_store %arg12[%c0_78, %c0_79], %186 {strides = array<i32>} : memref<8x128xf32, #tpu.memory_space<vmem>>, vector<8x128xf32>,
    %188 = arith.truncf %174 : vector<8x128xf32> to vector<8x128xbf16>
    %c8_i32_80 = arith.constant 8 : i32
    %189 = arith.muli %c2_i32, %c8_i32_80 : i32
    %190 = arith.index_cast %189 : i32 to index
    %c0_81 = arith.constant 0 : index
    %191 = vector.load %arg10[%190, %c0_81] : memref<64x128xbf16, #tpu.memory_space<vmem>>, vector<8x128xbf16>
    tpu.vector_store %arg10[%190, %c0_81], %188 {strides = array<i32>} : memref<64x128xbf16, #tpu.memory_space<vmem>>, vector<8x128xbf16>,
    %c3_i32 = arith.constant 3 : i32
    %c0_82 = arith.constant 0 : index
    %c0_83 = arith.constant 0 : index
    %192 = vector.load %arg11[%c0_82, %c0_83] : memref<8x128xf32, #tpu.memory_space<vmem>>, vector<8x128xf32>
    %c0_84 = arith.constant 0 : index
    %c0_85 = arith.constant 0 : index
    %193 = vector.load %arg12[%c0_84, %c0_85] : memref<8x128xf32, #tpu.memory_space<vmem>>, vector<8x128xf32>
    %c1_i32_86 = arith.constant 1 : i32
    %194 = arith.addi %c3_i32, %c1_i32_86 : i32
    %c8_i32_87 = arith.constant 8 : i32
    %195 = arith.muli %194, %c8_i32_87 : i32
    %196 = arith.index_cast %195 : i32 to index
    %c0_88 = arith.constant 0 : index
    %197 = vector.load %arg9[%196, %c0_88] : memref<72x512xf32, #tpu.memory_space<vmem>>, vector<8x512xf32>
    %198 = arith.truncf %192 : vector<8x128xf32> to vector<8x128xbf16>
    %c0_89 = arith.constant 0 : index
    %c0_90 = arith.constant 0 : index
    %199 = vector.load %arg4[%c0_89, %c0_90] : memref<128x512xbf16, #tpu.memory_space<vmem>>, vector<128x512xbf16>
    %cst_91 = arith.constant dense<0.000000e+00> : vector<8x512xf32>
    %200 = tpu.matmul %198, %199, %cst_91 {dimension_numbers = #tpu.dot_dimension_numbers<[1], [0], [0], [1], [0, 0, 1, 1], [], []>} : vector<8x128xbf16>, vector<128x512xbf16>, vector<8x512xf32> -> vector<8x512xf32>
    %201 = arith.addf %197, %200 : vector<8x512xf32>
    %202 = vector.extract_strided_slice %201 {offsets = [0, 0], sizes = [8, 128], strides = [1, 1]} : vector<8x512xf32> to vector<8x128xf32>
    %203 = arith.negf %202 : vector<8x128xf32>
    %204 = math.exp %203 : vector<8x128xf32>
    %cst_92 = arith.constant 1.000000e+00 : f32
    %205 = vector.broadcast %cst_92 : f32 to vector<8x128xf32>
    %206 = arith.addf %205, %204 : vector<8x128xf32>
    %207 = arith.divf %205, %206 : vector<8x128xf32>
    %208 = vector.extract_strided_slice %201 {offsets = [0, 128], sizes = [8, 128], strides = [1, 1]} : vector<8x512xf32> to vector<8x128xf32>
    %209 = arith.negf %208 : vector<8x128xf32>
    %210 = math.exp %209 : vector<8x128xf32>
    %cst_93 = arith.constant 1.000000e+00 : f32
    %211 = vector.broadcast %cst_93 : f32 to vector<8x128xf32>
    %212 = arith.addf %211, %210 : vector<8x128xf32>
    %213 = arith.divf %211, %212 : vector<8x128xf32>
    %214 = vector.extract_strided_slice %201 {offsets = [0, 256], sizes = [8, 128], strides = [1, 1]} : vector<8x512xf32> to vector<8x128xf32>
    %215 = math.tanh %214 : vector<8x128xf32>
    %216 = vector.extract_strided_slice %201 {offsets = [0, 384], sizes = [8, 128], strides = [1, 1]} : vector<8x512xf32> to vector<8x128xf32>
    %217 = arith.negf %216 : vector<8x128xf32>
    %218 = math.exp %217 : vector<8x128xf32>
    %cst_94 = arith.constant 1.000000e+00 : f32
    %219 = vector.broadcast %cst_94 : f32 to vector<8x128xf32>
    %220 = arith.addf %219, %218 : vector<8x128xf32>
    %221 = arith.divf %219, %220 : vector<8x128xf32>
    %222 = arith.mulf %213, %193 : vector<8x128xf32>
    %223 = arith.mulf %207, %215 : vector<8x128xf32>
    %224 = arith.addf %222, %223 : vector<8x128xf32>
    %225 = math.tanh %224 : vector<8x128xf32>
    %226 = arith.mulf %221, %225 : vector<8x128xf32>
    %c8_i32_95 = arith.constant 8 : i32
    %227 = arith.muli %c3_i32, %c8_i32_95 : i32
    %228 = arith.index_cast %227 : i32 to index
    %c0_96 = arith.constant 0 : index
    %229 = vector.load %arg2[%228, %c0_96] : memref<64x1xf32, #tpu.memory_space<vmem>>, vector<8x1xf32>
    %cst_97 = arith.constant 5.000000e-01 : f32
    %230 = vector.broadcast %cst_97 : f32 to vector<8x1xf32>
    %231 = arith.cmpf ogt, %229, %230 : vector<8x1xf32>
    %232 = vector.shape_cast %231 : vector<8x1xi1> to vector<8x1xi1>
    %233 = vector.broadcast %232 : vector<8x1xi1> to vector<8x128xi1>
    %234 = arith.select %233, %226, %192 : vector<8x128xi1>, vector<8x128xf32>
    %c0_98 = arith.constant 0 : index
    %c0_99 = arith.constant 0 : index
    %235 = vector.load %arg11[%c0_98, %c0_99] : memref<8x128xf32, #tpu.memory_space<vmem>>, vector<8x128xf32>
    tpu.vector_store %arg11[%c0_98, %c0_99], %234 {strides = array<i32>} : memref<8x128xf32, #tpu.memory_space<vmem>>, vector<8x128xf32>,
    %236 = vector.shape_cast %231 : vector<8x1xi1> to vector<8x1xi1>
    %237 = vector.broadcast %236 : vector<8x1xi1> to vector<8x128xi1>
    %238 = arith.select %237, %224, %193 : vector<8x128xi1>, vector<8x128xf32>
    %c0_100 = arith.constant 0 : index
    %c0_101 = arith.constant 0 : index
    %239 = vector.load %arg12[%c0_100, %c0_101] : memref<8x128xf32, #tpu.memory_space<vmem>>, vector<8x128xf32>
    tpu.vector_store %arg12[%c0_100, %c0_101], %238 {strides = array<i32>} : memref<8x128xf32, #tpu.memory_space<vmem>>, vector<8x128xf32>,
    %240 = arith.truncf %226 : vector<8x128xf32> to vector<8x128xbf16>
    %c8_i32_102 = arith.constant 8 : i32
    %241 = arith.muli %c3_i32, %c8_i32_102 : i32
    %242 = arith.index_cast %241 : i32 to index
    %c0_103 = arith.constant 0 : index
    %243 = vector.load %arg10[%242, %c0_103] : memref<64x128xbf16, #tpu.memory_space<vmem>>, vector<8x128xbf16>
    tpu.vector_store %arg10[%242, %c0_103], %240 {strides = array<i32>} : memref<64x128xbf16, #tpu.memory_space<vmem>>, vector<8x128xbf16>,
    %c4_i32 = arith.constant 4 : i32
    %c0_104 = arith.constant 0 : index
    %c0_105 = arith.constant 0 : index
    %244 = vector.load %arg11[%c0_104, %c0_105] : memref<8x128xf32, #tpu.memory_space<vmem>>, vector<8x128xf32>
    %c0_106 = arith.constant 0 : index
    %c0_107 = arith.constant 0 : index
    %245 = vector.load %arg12[%c0_106, %c0_107] : memref<8x128xf32, #tpu.memory_space<vmem>>, vector<8x128xf32>
    %c1_i32_108 = arith.constant 1 : i32
    %246 = arith.addi %c4_i32, %c1_i32_108 : i32
    %c8_i32_109 = arith.constant 8 : i32
    %247 = arith.muli %246, %c8_i32_109 : i32
    %248 = arith.index_cast %247 : i32 to index
    %c0_110 = arith.constant 0 : index
    %249 = vector.load %arg9[%248, %c0_110] : memref<72x512xf32, #tpu.memory_space<vmem>>, vector<8x512xf32>
    %250 = arith.truncf %244 : vector<8x128xf32> to vector<8x128xbf16>
    %c0_111 = arith.constant 0 : index
    %c0_112 = arith.constant 0 : index
    %251 = vector.load %arg4[%c0_111, %c0_112] : memref<128x512xbf16, #tpu.memory_space<vmem>>, vector<128x512xbf16>
    %cst_113 = arith.constant dense<0.000000e+00> : vector<8x512xf32>
    %252 = tpu.matmul %250, %251, %cst_113 {dimension_numbers = #tpu.dot_dimension_numbers<[1], [0], [0], [1], [0, 0, 1, 1], [], []>} : vector<8x128xbf16>, vector<128x512xbf16>, vector<8x512xf32> -> vector<8x512xf32>
    %253 = arith.addf %249, %252 : vector<8x512xf32>
    %254 = vector.extract_strided_slice %253 {offsets = [0, 0], sizes = [8, 128], strides = [1, 1]} : vector<8x512xf32> to vector<8x128xf32>
    %255 = arith.negf %254 : vector<8x128xf32>
    %256 = math.exp %255 : vector<8x128xf32>
    %cst_114 = arith.constant 1.000000e+00 : f32
    %257 = vector.broadcast %cst_114 : f32 to vector<8x128xf32>
    %258 = arith.addf %257, %256 : vector<8x128xf32>
    %259 = arith.divf %257, %258 : vector<8x128xf32>
    %260 = vector.extract_strided_slice %253 {offsets = [0, 128], sizes = [8, 128], strides = [1, 1]} : vector<8x512xf32> to vector<8x128xf32>
    %261 = arith.negf %260 : vector<8x128xf32>
    %262 = math.exp %261 : vector<8x128xf32>
    %cst_115 = arith.constant 1.000000e+00 : f32
    %263 = vector.broadcast %cst_115 : f32 to vector<8x128xf32>
    %264 = arith.addf %263, %262 : vector<8x128xf32>
    %265 = arith.divf %263, %264 : vector<8x128xf32>
    %266 = vector.extract_strided_slice %253 {offsets = [0, 256], sizes = [8, 128], strides = [1, 1]} : vector<8x512xf32> to vector<8x128xf32>
    %267 = math.tanh %266 : vector<8x128xf32>
    %268 = vector.extract_strided_slice %253 {offsets = [0, 384], sizes = [8, 128], strides = [1, 1]} : vector<8x512xf32> to vector<8x128xf32>
    %269 = arith.negf %268 : vector<8x128xf32>
    %270 = math.exp %269 : vector<8x128xf32>
    %cst_116 = arith.constant 1.000000e+00 : f32
    %271 = vector.broadcast %cst_116 : f32 to vector<8x128xf32>
    %272 = arith.addf %271, %270 : vector<8x128xf32>
    %273 = arith.divf %271, %272 : vector<8x128xf32>
    %274 = arith.mulf %265, %245 : vector<8x128xf32>
    %275 = arith.mulf %259, %267 : vector<8x128xf32>
    %276 = arith.addf %274, %275 : vector<8x128xf32>
    %277 = math.tanh %276 : vector<8x128xf32>
    %278 = arith.mulf %273, %277 : vector<8x128xf32>
    %c8_i32_117 = arith.constant 8 : i32
    %279 = arith.muli %c4_i32, %c8_i32_117 : i32
    %280 = arith.index_cast %279 : i32 to index
    %c0_118 = arith.constant 0 : index
    %281 = vector.load %arg2[%280, %c0_118] : memref<64x1xf32, #tpu.memory_space<vmem>>, vector<8x1xf32>
    %cst_119 = arith.constant 5.000000e-01 : f32
    %282 = vector.broadcast %cst_119 : f32 to vector<8x1xf32>
    %283 = arith.cmpf ogt, %281, %282 : vector<8x1xf32>
    %284 = vector.shape_cast %283 : vector<8x1xi1> to vector<8x1xi1>
    %285 = vector.broadcast %284 : vector<8x1xi1> to vector<8x128xi1>
    %286 = arith.select %285, %278, %244 : vector<8x128xi1>, vector<8x128xf32>
    %c0_120 = arith.constant 0 : index
    %c0_121 = arith.constant 0 : index
    %287 = vector.load %arg11[%c0_120, %c0_121] : memref<8x128xf32, #tpu.memory_space<vmem>>, vector<8x128xf32>
    tpu.vector_store %arg11[%c0_120, %c0_121], %286 {strides = array<i32>} : memref<8x128xf32, #tpu.memory_space<vmem>>, vector<8x128xf32>,
    %288 = vector.shape_cast %283 : vector<8x1xi1> to vector<8x1xi1>
    %289 = vector.broadcast %288 : vector<8x1xi1> to vector<8x128xi1>
    %290 = arith.select %289, %276, %245 : vector<8x128xi1>, vector<8x128xf32>
    %c0_122 = arith.constant 0 : index
    %c0_123 = arith.constant 0 : index
    %291 = vector.load %arg12[%c0_122, %c0_123] : memref<8x128xf32, #tpu.memory_space<vmem>>, vector<8x128xf32>
    tpu.vector_store %arg12[%c0_122, %c0_123], %290 {strides = array<i32>} : memref<8x128xf32, #tpu.memory_space<vmem>>, vector<8x128xf32>,
    %292 = arith.truncf %278 : vector<8x128xf32> to vector<8x128xbf16>
    %c8_i32_124 = arith.constant 8 : i32
    %293 = arith.muli %c4_i32, %c8_i32_124 : i32
    %294 = arith.index_cast %293 : i32 to index
    %c0_125 = arith.constant 0 : index
    %295 = vector.load %arg10[%294, %c0_125] : memref<64x128xbf16, #tpu.memory_space<vmem>>, vector<8x128xbf16>
    tpu.vector_store %arg10[%294, %c0_125], %292 {strides = array<i32>} : memref<64x128xbf16, #tpu.memory_space<vmem>>, vector<8x128xbf16>,
    %c5_i32 = arith.constant 5 : i32
    %c0_126 = arith.constant 0 : index
    %c0_127 = arith.constant 0 : index
    %296 = vector.load %arg11[%c0_126, %c0_127] : memref<8x128xf32, #tpu.memory_space<vmem>>, vector<8x128xf32>
    %c0_128 = arith.constant 0 : index
    %c0_129 = arith.constant 0 : index
    %297 = vector.load %arg12[%c0_128, %c0_129] : memref<8x128xf32, #tpu.memory_space<vmem>>, vector<8x128xf32>
    %c1_i32_130 = arith.constant 1 : i32
    %298 = arith.addi %c5_i32, %c1_i32_130 : i32
    %c8_i32_131 = arith.constant 8 : i32
    %299 = arith.muli %298, %c8_i32_131 : i32
    %300 = arith.index_cast %299 : i32 to index
    %c0_132 = arith.constant 0 : index
    %301 = vector.load %arg9[%300, %c0_132] : memref<72x512xf32, #tpu.memory_space<vmem>>, vector<8x512xf32>
    %302 = arith.truncf %296 : vector<8x128xf32> to vector<8x128xbf16>
    %c0_133 = arith.constant 0 : index
    %c0_134 = arith.constant 0 : index
    %303 = vector.load %arg4[%c0_133, %c0_134] : memref<128x512xbf16, #tpu.memory_space<vmem>>, vector<128x512xbf16>
    %cst_135 = arith.constant dense<0.000000e+00> : vector<8x512xf32>
    %304 = tpu.matmul %302, %303, %cst_135 {dimension_numbers = #tpu.dot_dimension_numbers<[1], [0], [0], [1], [0, 0, 1, 1], [], []>} : vector<8x128xbf16>, vector<128x512xbf16>, vector<8x512xf32> -> vector<8x512xf32>
    %305 = arith.addf %301, %304 : vector<8x512xf32>
    %306 = vector.extract_strided_slice %305 {offsets = [0, 0], sizes = [8, 128], strides = [1, 1]} : vector<8x512xf32> to vector<8x128xf32>
    %307 = arith.negf %306 : vector<8x128xf32>
    %308 = math.exp %307 : vector<8x128xf32>
    %cst_136 = arith.constant 1.000000e+00 : f32
    %309 = vector.broadcast %cst_136 : f32 to vector<8x128xf32>
    %310 = arith.addf %309, %308 : vector<8x128xf32>
    %311 = arith.divf %309, %310 : vector<8x128xf32>
    %312 = vector.extract_strided_slice %305 {offsets = [0, 128], sizes = [8, 128], strides = [1, 1]} : vector<8x512xf32> to vector<8x128xf32>
    %313 = arith.negf %312 : vector<8x128xf32>
    %314 = math.exp %313 : vector<8x128xf32>
    %cst_137 = arith.constant 1.000000e+00 : f32
    %315 = vector.broadcast %cst_137 : f32 to vector<8x128xf32>
    %316 = arith.addf %315, %314 : vector<8x128xf32>
    %317 = arith.divf %315, %316 : vector<8x128xf32>
    %318 = vector.extract_strided_slice %305 {offsets = [0, 256], sizes = [8, 128], strides = [1, 1]} : vector<8x512xf32> to vector<8x128xf32>
    %319 = math.tanh %318 : vector<8x128xf32>
    %320 = vector.extract_strided_slice %305 {offsets = [0, 384], sizes = [8, 128], strides = [1, 1]} : vector<8x512xf32> to vector<8x128xf32>
    %321 = arith.negf %320 : vector<8x128xf32>
    %322 = math.exp %321 : vector<8x128xf32>
    %cst_138 = arith.constant 1.000000e+00 : f32
    %323 = vector.broadcast %cst_138 : f32 to vector<8x128xf32>
    %324 = arith.addf %323, %322 : vector<8x128xf32>
    %325 = arith.divf %323, %324 : vector<8x128xf32>
    %326 = arith.mulf %317, %297 : vector<8x128xf32>
    %327 = arith.mulf %311, %319 : vector<8x128xf32>
    %328 = arith.addf %326, %327 : vector<8x128xf32>
    %329 = math.tanh %328 : vector<8x128xf32>
    %330 = arith.mulf %325, %329 : vector<8x128xf32>
    %c8_i32_139 = arith.constant 8 : i32
    %331 = arith.muli %c5_i32, %c8_i32_139 : i32
    %332 = arith.index_cast %331 : i32 to index
    %c0_140 = arith.constant 0 : index
    %333 = vector.load %arg2[%332, %c0_140] : memref<64x1xf32, #tpu.memory_space<vmem>>, vector<8x1xf32>
    %cst_141 = arith.constant 5.000000e-01 : f32
    %334 = vector.broadcast %cst_141 : f32 to vector<8x1xf32>
    %335 = arith.cmpf ogt, %333, %334 : vector<8x1xf32>
    %336 = vector.shape_cast %335 : vector<8x1xi1> to vector<8x1xi1>
    %337 = vector.broadcast %336 : vector<8x1xi1> to vector<8x128xi1>
    %338 = arith.select %337, %330, %296 : vector<8x128xi1>, vector<8x128xf32>
    %c0_142 = arith.constant 0 : index
    %c0_143 = arith.constant 0 : index
    %339 = vector.load %arg11[%c0_142, %c0_143] : memref<8x128xf32, #tpu.memory_space<vmem>>, vector<8x128xf32>
    tpu.vector_store %arg11[%c0_142, %c0_143], %338 {strides = array<i32>} : memref<8x128xf32, #tpu.memory_space<vmem>>, vector<8x128xf32>,
    %340 = vector.shape_cast %335 : vector<8x1xi1> to vector<8x1xi1>
    %341 = vector.broadcast %340 : vector<8x1xi1> to vector<8x128xi1>
    %342 = arith.select %341, %328, %297 : vector<8x128xi1>, vector<8x128xf32>
    %c0_144 = arith.constant 0 : index
    %c0_145 = arith.constant 0 : index
    %343 = vector.load %arg12[%c0_144, %c0_145] : memref<8x128xf32, #tpu.memory_space<vmem>>, vector<8x128xf32>
    tpu.vector_store %arg12[%c0_144, %c0_145], %342 {strides = array<i32>} : memref<8x128xf32, #tpu.memory_space<vmem>>, vector<8x128xf32>,
    %344 = arith.truncf %330 : vector<8x128xf32> to vector<8x128xbf16>
    %c8_i32_146 = arith.constant 8 : i32
    %345 = arith.muli %c5_i32, %c8_i32_146 : i32
    %346 = arith.index_cast %345 : i32 to index
    %c0_147 = arith.constant 0 : index
    %347 = vector.load %arg10[%346, %c0_147] : memref<64x128xbf16, #tpu.memory_space<vmem>>, vector<8x128xbf16>
    tpu.vector_store %arg10[%346, %c0_147], %344 {strides = array<i32>} : memref<64x128xbf16, #tpu.memory_space<vmem>>, vector<8x128xbf16>,
    %c6_i32 = arith.constant 6 : i32
    %c0_148 = arith.constant 0 : index
    %c0_149 = arith.constant 0 : index
    %348 = vector.load %arg11[%c0_148, %c0_149] : memref<8x128xf32, #tpu.memory_space<vmem>>, vector<8x128xf32>
    %c0_150 = arith.constant 0 : index
    %c0_151 = arith.constant 0 : index
    %349 = vector.load %arg12[%c0_150, %c0_151] : memref<8x128xf32, #tpu.memory_space<vmem>>, vector<8x128xf32>
    %c1_i32_152 = arith.constant 1 : i32
    %350 = arith.addi %c6_i32, %c1_i32_152 : i32
    %c8_i32_153 = arith.constant 8 : i32
    %351 = arith.muli %350, %c8_i32_153 : i32
    %352 = arith.index_cast %351 : i32 to index
    %c0_154 = arith.constant 0 : index
    %353 = vector.load %arg9[%352, %c0_154] : memref<72x512xf32, #tpu.memory_space<vmem>>, vector<8x512xf32>
    %354 = arith.truncf %348 : vector<8x128xf32> to vector<8x128xbf16>
    %c0_155 = arith.constant 0 : index
    %c0_156 = arith.constant 0 : index
    %355 = vector.load %arg4[%c0_155, %c0_156] : memref<128x512xbf16, #tpu.memory_space<vmem>>, vector<128x512xbf16>
    %cst_157 = arith.constant dense<0.000000e+00> : vector<8x512xf32>
    %356 = tpu.matmul %354, %355, %cst_157 {dimension_numbers = #tpu.dot_dimension_numbers<[1], [0], [0], [1], [0, 0, 1, 1], [], []>} : vector<8x128xbf16>, vector<128x512xbf16>, vector<8x512xf32> -> vector<8x512xf32>
    %357 = arith.addf %353, %356 : vector<8x512xf32>
    %358 = vector.extract_strided_slice %357 {offsets = [0, 0], sizes = [8, 128], strides = [1, 1]} : vector<8x512xf32> to vector<8x128xf32>
    %359 = arith.negf %358 : vector<8x128xf32>
    %360 = math.exp %359 : vector<8x128xf32>
    %cst_158 = arith.constant 1.000000e+00 : f32
    %361 = vector.broadcast %cst_158 : f32 to vector<8x128xf32>
    %362 = arith.addf %361, %360 : vector<8x128xf32>
    %363 = arith.divf %361, %362 : vector<8x128xf32>
    %364 = vector.extract_strided_slice %357 {offsets = [0, 128], sizes = [8, 128], strides = [1, 1]} : vector<8x512xf32> to vector<8x128xf32>
    %365 = arith.negf %364 : vector<8x128xf32>
    %366 = math.exp %365 : vector<8x128xf32>
    %cst_159 = arith.constant 1.000000e+00 : f32
    %367 = vector.broadcast %cst_159 : f32 to vector<8x128xf32>
    %368 = arith.addf %367, %366 : vector<8x128xf32>
    %369 = arith.divf %367, %368 : vector<8x128xf32>
    %370 = vector.extract_strided_slice %357 {offsets = [0, 256], sizes = [8, 128], strides = [1, 1]} : vector<8x512xf32> to vector<8x128xf32>
    %371 = math.tanh %370 : vector<8x128xf32>
    %372 = vector.extract_strided_slice %357 {offsets = [0, 384], sizes = [8, 128], strides = [1, 1]} : vector<8x512xf32> to vector<8x128xf32>
    %373 = arith.negf %372 : vector<8x128xf32>
    %374 = math.exp %373 : vector<8x128xf32>
    %cst_160 = arith.constant 1.000000e+00 : f32
    %375 = vector.broadcast %cst_160 : f32 to vector<8x128xf32>
    %376 = arith.addf %375, %374 : vector<8x128xf32>
    %377 = arith.divf %375, %376 : vector<8x128xf32>
    %378 = arith.mulf %369, %349 : vector<8x128xf32>
    %379 = arith.mulf %363, %371 : vector<8x128xf32>
    %380 = arith.addf %378, %379 : vector<8x128xf32>
    %381 = math.tanh %380 : vector<8x128xf32>
    %382 = arith.mulf %377, %381 : vector<8x128xf32>
    %c8_i32_161 = arith.constant 8 : i32
    %383 = arith.muli %c6_i32, %c8_i32_161 : i32
    %384 = arith.index_cast %383 : i32 to index
    %c0_162 = arith.constant 0 : index
    %385 = vector.load %arg2[%384, %c0_162] : memref<64x1xf32, #tpu.memory_space<vmem>>, vector<8x1xf32>
    %cst_163 = arith.constant 5.000000e-01 : f32
    %386 = vector.broadcast %cst_163 : f32 to vector<8x1xf32>
    %387 = arith.cmpf ogt, %385, %386 : vector<8x1xf32>
    %388 = vector.shape_cast %387 : vector<8x1xi1> to vector<8x1xi1>
    %389 = vector.broadcast %388 : vector<8x1xi1> to vector<8x128xi1>
    %390 = arith.select %389, %382, %348 : vector<8x128xi1>, vector<8x128xf32>
    %c0_164 = arith.constant 0 : index
    %c0_165 = arith.constant 0 : index
    %391 = vector.load %arg11[%c0_164, %c0_165] : memref<8x128xf32, #tpu.memory_space<vmem>>, vector<8x128xf32>
    tpu.vector_store %arg11[%c0_164, %c0_165], %390 {strides = array<i32>} : memref<8x128xf32, #tpu.memory_space<vmem>>, vector<8x128xf32>,
    %392 = vector.shape_cast %387 : vector<8x1xi1> to vector<8x1xi1>
    %393 = vector.broadcast %392 : vector<8x1xi1> to vector<8x128xi1>
    %394 = arith.select %393, %380, %349 : vector<8x128xi1>, vector<8x128xf32>
    %c0_166 = arith.constant 0 : index
    %c0_167 = arith.constant 0 : index
    %395 = vector.load %arg12[%c0_166, %c0_167] : memref<8x128xf32, #tpu.memory_space<vmem>>, vector<8x128xf32>
    tpu.vector_store %arg12[%c0_166, %c0_167], %394 {strides = array<i32>} : memref<8x128xf32, #tpu.memory_space<vmem>>, vector<8x128xf32>,
    %396 = arith.truncf %382 : vector<8x128xf32> to vector<8x128xbf16>
    %c8_i32_168 = arith.constant 8 : i32
    %397 = arith.muli %c6_i32, %c8_i32_168 : i32
    %398 = arith.index_cast %397 : i32 to index
    %c0_169 = arith.constant 0 : index
    %399 = vector.load %arg10[%398, %c0_169] : memref<64x128xbf16, #tpu.memory_space<vmem>>, vector<8x128xbf16>
    tpu.vector_store %arg10[%398, %c0_169], %396 {strides = array<i32>} : memref<64x128xbf16, #tpu.memory_space<vmem>>, vector<8x128xbf16>,
    %c7_i32 = arith.constant 7 : i32
    %c0_170 = arith.constant 0 : index
    %c0_171 = arith.constant 0 : index
    %400 = vector.load %arg11[%c0_170, %c0_171] : memref<8x128xf32, #tpu.memory_space<vmem>>, vector<8x128xf32>
    %c0_172 = arith.constant 0 : index
    %c0_173 = arith.constant 0 : index
    %401 = vector.load %arg12[%c0_172, %c0_173] : memref<8x128xf32, #tpu.memory_space<vmem>>, vector<8x128xf32>
    %c1_i32_174 = arith.constant 1 : i32
    %402 = arith.addi %c7_i32, %c1_i32_174 : i32
    %c8_i32_175 = arith.constant 8 : i32
    %403 = arith.muli %402, %c8_i32_175 : i32
    %404 = arith.index_cast %403 : i32 to index
    %c0_176 = arith.constant 0 : index
    %405 = vector.load %arg9[%404, %c0_176] : memref<72x512xf32, #tpu.memory_space<vmem>>, vector<8x512xf32>
    %406 = arith.truncf %400 : vector<8x128xf32> to vector<8x128xbf16>
    %c0_177 = arith.constant 0 : index
    %c0_178 = arith.constant 0 : index
    %407 = vector.load %arg4[%c0_177, %c0_178] : memref<128x512xbf16, #tpu.memory_space<vmem>>, vector<128x512xbf16>
    %cst_179 = arith.constant dense<0.000000e+00> : vector<8x512xf32>
    %408 = tpu.matmul %406, %407, %cst_179 {dimension_numbers = #tpu.dot_dimension_numbers<[1], [0], [0], [1], [0, 0, 1, 1], [], []>} : vector<8x128xbf16>, vector<128x512xbf16>, vector<8x512xf32> -> vector<8x512xf32>
    %409 = arith.addf %405, %408 : vector<8x512xf32>
    %410 = vector.extract_strided_slice %409 {offsets = [0, 0], sizes = [8, 128], strides = [1, 1]} : vector<8x512xf32> to vector<8x128xf32>
    %411 = arith.negf %410 : vector<8x128xf32>
    %412 = math.exp %411 : vector<8x128xf32>
    %cst_180 = arith.constant 1.000000e+00 : f32
    %413 = vector.broadcast %cst_180 : f32 to vector<8x128xf32>
    %414 = arith.addf %413, %412 : vector<8x128xf32>
    %415 = arith.divf %413, %414 : vector<8x128xf32>
    %416 = vector.extract_strided_slice %409 {offsets = [0, 128], sizes = [8, 128], strides = [1, 1]} : vector<8x512xf32> to vector<8x128xf32>
    %417 = arith.negf %416 : vector<8x128xf32>
    %418 = math.exp %417 : vector<8x128xf32>
    %cst_181 = arith.constant 1.000000e+00 : f32
    %419 = vector.broadcast %cst_181 : f32 to vector<8x128xf32>
    %420 = arith.addf %419, %418 : vector<8x128xf32>
    %421 = arith.divf %419, %420 : vector<8x128xf32>
    %422 = vector.extract_strided_slice %409 {offsets = [0, 256], sizes = [8, 128], strides = [1, 1]} : vector<8x512xf32> to vector<8x128xf32>
    %423 = math.tanh %422 : vector<8x128xf32>
    %424 = vector.extract_strided_slice %409 {offsets = [0, 384], sizes = [8, 128], strides = [1, 1]} : vector<8x512xf32> to vector<8x128xf32>
    %425 = arith.negf %424 : vector<8x128xf32>
    %426 = math.exp %425 : vector<8x128xf32>
    %cst_182 = arith.constant 1.000000e+00 : f32
    %427 = vector.broadcast %cst_182 : f32 to vector<8x128xf32>
    %428 = arith.addf %427, %426 : vector<8x128xf32>
    %429 = arith.divf %427, %428 : vector<8x128xf32>
    %430 = arith.mulf %421, %401 : vector<8x128xf32>
    %431 = arith.mulf %415, %423 : vector<8x128xf32>
    %432 = arith.addf %430, %431 : vector<8x128xf32>
    %433 = math.tanh %432 : vector<8x128xf32>
    %434 = arith.mulf %429, %433 : vector<8x128xf32>
    %c8_i32_183 = arith.constant 8 : i32
    %435 = arith.muli %c7_i32, %c8_i32_183 : i32
    %436 = arith.index_cast %435 : i32 to index
    %c0_184 = arith.constant 0 : index
    %437 = vector.load %arg2[%436, %c0_184] : memref<64x1xf32, #tpu.memory_space<vmem>>, vector<8x1xf32>
    %cst_185 = arith.constant 5.000000e-01 : f32
    %438 = vector.broadcast %cst_185 : f32 to vector<8x1xf32>
    %439 = arith.cmpf ogt, %437, %438 : vector<8x1xf32>
    %440 = vector.shape_cast %439 : vector<8x1xi1> to vector<8x1xi1>
    %441 = vector.broadcast %440 : vector<8x1xi1> to vector<8x128xi1>
    %442 = arith.select %441, %434, %400 : vector<8x128xi1>, vector<8x128xf32>
    %c0_186 = arith.constant 0 : index
    %c0_187 = arith.constant 0 : index
    %443 = vector.load %arg11[%c0_186, %c0_187] : memref<8x128xf32, #tpu.memory_space<vmem>>, vector<8x128xf32>
    tpu.vector_store %arg11[%c0_186, %c0_187], %442 {strides = array<i32>} : memref<8x128xf32, #tpu.memory_space<vmem>>, vector<8x128xf32>,
    %444 = vector.shape_cast %439 : vector<8x1xi1> to vector<8x1xi1>
    %445 = vector.broadcast %444 : vector<8x1xi1> to vector<8x128xi1>
    %446 = arith.select %445, %432, %401 : vector<8x128xi1>, vector<8x128xf32>
    %c0_188 = arith.constant 0 : index
    %c0_189 = arith.constant 0 : index
    %447 = vector.load %arg12[%c0_188, %c0_189] : memref<8x128xf32, #tpu.memory_space<vmem>>, vector<8x128xf32>
    tpu.vector_store %arg12[%c0_188, %c0_189], %446 {strides = array<i32>} : memref<8x128xf32, #tpu.memory_space<vmem>>, vector<8x128xf32>,
    %448 = arith.truncf %434 : vector<8x128xf32> to vector<8x128xbf16>
    %c8_i32_190 = arith.constant 8 : i32
    %449 = arith.muli %c7_i32, %c8_i32_190 : i32
    %450 = arith.index_cast %449 : i32 to index
    %c0_191 = arith.constant 0 : index
    %451 = vector.load %arg10[%450, %c0_191] : memref<64x128xbf16, #tpu.memory_space<vmem>>, vector<8x128xbf16>
    tpu.vector_store %arg10[%450, %c0_191], %448 {strides = array<i32>} : memref<64x128xbf16, #tpu.memory_space<vmem>>, vector<8x128xbf16>,
    %c8_i32_192 = arith.constant 8 : i32
    %c0_193 = arith.constant 0 : index
    %c0_194 = arith.constant 0 : index
    %452 = vector.load %arg10[%c0_193, %c0_194] : memref<64x128xbf16, #tpu.memory_space<vmem>>, vector<64x128xbf16>
    %c0_195 = arith.constant 0 : index
    %c0_196 = arith.constant 0 : index
    %453 = vector.load %arg6[%c0_195, %c0_196] : memref<128x256xbf16, #tpu.memory_space<vmem>>, vector<128x256xbf16>
    %cst_197 = arith.constant dense<0.000000e+00> : vector<64x256xf32>
    %454 = tpu.matmul %452, %453, %cst_197 {dimension_numbers = #tpu.dot_dimension_numbers<[1], [0], [0], [1], [0, 0, 1, 1], [], []>} : vector<64x128xbf16>, vector<128x256xbf16>, vector<64x256xf32> -> vector<64x256xf32>
    %c0_198 = arith.constant 0 : index
    %c0_199 = arith.constant 0 : index
    %455 = vector.load %arg7[%c0_198, %c0_199] : memref<1x256xf32, #tpu.memory_space<vmem>>, vector<1x256xf32>
    %456 = vector.broadcast %455 : vector<1x256xf32> to vector<64x256xf32>
    %457 = arith.addf %454, %456 : vector<64x256xf32>
    %c0_200 = arith.constant 0 : index
    %c0_201 = arith.constant 0 : index
    %458 = vector.load %arg2[%c0_200, %c0_201] : memref<64x1xf32, #tpu.memory_space<vmem>>, vector<64x1xf32>
    %cst_202 = arith.constant 5.000000e-01 : f32
    %459 = vector.broadcast %cst_202 : f32 to vector<64x1xf32>
    %460 = arith.cmpf ogt, %458, %459 : vector<64x1xf32>
    %cst_203 = arith.constant 0.000000e+00 : f32
    %461 = vector.shape_cast %460 : vector<64x1xi1> to vector<64x1xi1>
    %462 = vector.broadcast %461 : vector<64x1xi1> to vector<64x256xi1>
    %463 = vector.broadcast %cst_203 : f32 to vector<64x256xf32>
    %464 = arith.select %462, %457, %463 : vector<64x256xi1>, vector<64x256xf32>
    %c0_204 = arith.constant 0 : index
    %c0_205 = arith.constant 0 : index
    %465 = vector.load %arg8[%c0_204, %c0_205] : memref<64x256xf32, #tpu.memory_space<vmem>>, vector<64x256xf32>
    tpu.vector_store %arg8[%c0_204, %c0_205], %464 {strides = array<i32>} : memref<64x256xf32, #tpu.memory_space<vmem>>, vector<64x256xf32>,
    return
  }
  func.func @transform_0(%arg0: i32) -> (i32, i32) {
    %c0_i32 = arith.constant 0 : i32
    %c0_i32_0 = arith.constant 0 : i32
    %c0_i32_1 = arith.constant 0 : i32
    return %c0_i32, %c0_i32_0 : i32, i32
  }
  func.func @transform_1(%arg0: i32) -> (i32, i32) {
    %c0_i32 = arith.constant 0 : i32
    %c0_i32_0 = arith.constant 0 : i32
    %c0_i32_1 = arith.constant 0 : i32
    return %c0_i32, %c0_i32_0 : i32, i32
  }
  func.func @transform_2(%arg0: i32) -> (i32, i32) {
    %c0_i32 = arith.constant 0 : i32
    %c0_i32_0 = arith.constant 0 : i32
    %c0_i32_1 = arith.constant 0 : i32
    return %c0_i32, %c0_i32_0 : i32, i32
  }
  func.func @transform_3(%arg0: i32) -> (i32, i32) {
    %c0_i32 = arith.constant 0 : i32
    %c0_i32_0 = arith.constant 0 : i32
    %c0_i32_1 = arith.constant 0 : i32
    return %c0_i32, %c0_i32_0 : i32, i32
  }
  func.func @transform_4(%arg0: i32) -> (i32, i32) {
    %c0_i32 = arith.constant 0 : i32
    %c0_i32_0 = arith.constant 0 : i32
    %c0_i32_1 = arith.constant 0 : i32
    return %c0_i32, %c0_i32_0 : i32, i32
  }
  func.func @transform_5(%arg0: i32) -> (i32, i32) {
    %c0_i32 = arith.constant 0 : i32
    %c0_i32_0 = arith.constant 0 : i32
    %c0_i32_1 = arith.constant 0 : i32
    return %c0_i32, %c0_i32_0 : i32, i32
  }
  func.func @transform_6(%arg0: i32) -> (i32, i32) {
    %c0_i32 = arith.constant 0 : i32
    %c0_i32_0 = arith.constant 0 : i32
    %c0_i32_1 = arith.constant 0 : i32
    return %c0_i32, %c0_i32_0 : i32, i32
  }
  func.func @transform_7(%arg0: i32) -> (i32, i32) {
    %c0_i32 = arith.constant 0 : i32
    %c0_i32_0 = arith.constant 0 : i32
    %c0_i32_1 = arith.constant 0 : i32
    return %c0_i32, %c0_i32_0 : i32, i32
  }
}

</mosaic_0001>

<bundles_post_ra>
// kernel: tpu_custom_call.1
= control target key start
LH: loop header
LB: loop body
LE: loop exit
PB: predicated region body
PF: predicated region fallthrough
CT: control target
= control target key end

     0   :  { %12 = vsyncpa [#allocation7], 0  ;;  %s5041_s0 = inlined_call_operand.vmem [shape: bf16[72,128], index: 0, kind: input, shape index: {}]   ;;  %s5042_s1 = inlined_call_operand.vmem [shape: f32[64,1], index: 1, kind: input, shape index: {}]   ;;  %s5043_s2 = inlined_call_operand.hbm [shape: bf16[128,512], index: 2, kind: input, shape index: {}]   ;;  %s5044_s3 = inlined_call_operand.hbm [shape: bf16[128,512], index: 3, kind: input, shape index: {}]   ;;  %s5045_s4 = inlined_call_operand.vmem [shape: f32[1,512], index: 4, kind: input, shape index: {}]   ;;  %s5046_s5 = inlined_call_operand.hbm [shape: bf16[128,256], index: 5, kind: input, shape index: {}]   ;;  %s5047_s6 = inlined_call_operand.vmem [shape: f32[1,256], index: 6, kind: input, shape index: {}]   ;;  %s5048_s7 = inlined_call_operand.hbm [shape: f32[64,256], index: 7, kind: output, shape index: {}]  }
   0x1   :  { %13 = vsyncpa [#allocation10], 0 }
   0x2   :  { %14 = vsyncpa [#allocation8], 0  ;;  %s4236_s24 = smov [#allocation9]   ;;  %s4237_s26 = smov [#allocation6]  }
   0x3   :  { %s36_s25 = sshll.u32 %s4236_s24, 4  ;;  %s24_s27 = sshll.u32 %s4237_s26, 4  ;;  %s37_s25 = int_to_ptr.vmem [resolvable:$true] %s36_s25  ;;  %s4285_s27 = int_to_ptr.vmem [resolvable:$true] %s24_s27 }
   0x4   :  { %s4142_s30 = scalar_lea.hbm %s5044_s3, 4096 }
   0x5   :  { %p4143_p0 = scmp.ne.s32.totalorder %s5044_s3, %s4142_s30  ;;  %p4146_p1 = scmp.lt.u32.totalorder %s4142_s30, %s5044_s3 }
   0x7   :  { %p4148_p2 = pnand %p4146_p1, %p4143_p0 }
   0x9   :  { %4151 = shalt.err (!%p4148_p2)
}
   0xa   :  { %s4152_s12 = scalar_lea.vmem %s37_s25, 4096  ;;  %p4157_p4 = scmp.lt.s32.totalorder %s37_s25, %s37_s25 }
   0xb   :  { %p4153_p3 = scmp.ne.s32.totalorder %s37_s25, %s4152_s12  ;;  %p4158_p5 = scmp.lt.s32.totalorder %s4152_s12, %s4152_s12 }
   0xd   :  { %p4159_p6 = por %p4158_p5, %p4157_p4 }
   0xf   :  { %p4160_p7 = pnand %p4159_p6, %p4153_p3 }
  0x11   :  { %4163 = shalt.err (!%p4160_p7)
}
  0x12   :  { %s4238_s13 = smov 256   ;;  %s4239_s14 = smov 16  }
  0x13   :  { %42 = dma.hbm_to_vmem [thread:$0]  %s5044_s3, 4096, %s37_s25, [#allocation10], %s4238_s13, %s4238_s13, %s4239_s14  }
  0x14   :  { %s4164_s19 = scalar_lea.hbm %s5043_s2, 4096 }
  0x15   :  { %p4165_p8 = scmp.ne.s32.totalorder %s5043_s2, %s4164_s19  ;;  %p4168_p9 = scmp.lt.u32.totalorder %s4164_s19, %s5043_s2 }
  0x17   :  { %p4170_p10 = pnand %p4168_p9, %p4165_p8 }
  0x19   :  { %4173 = shalt.err (!%p4170_p10)
}
  0x1a   :  { %s4174_s24 = scalar_lea.vmem %s4285_s27, 4096  ;;  %p4179_p12 = scmp.lt.s32.totalorder %s4285_s27, %s4285_s27 }
  0x1b   :  { %p4175_p11 = scmp.ne.s32.totalorder %s4285_s27, %s4174_s24  ;;  %p4180_p13 = scmp.lt.s32.totalorder %s4174_s24, %s4174_s24 }
  0x1d   :  { %p4181_p0 = por %p4180_p13, %p4179_p12 }
  0x1f   :  { %p4182_p1 = pnand %p4181_p0, %p4175_p11 }
  0x21   :  { %4185 = shalt.err (!%p4182_p1)
}
  0x22   :  { %30 = dma.hbm_to_vmem [thread:$0]  %s5043_s2, 4096, %s4285_s27, [#allocation7], %s4238_s13, %s4238_s13, %s4239_s14  }
  0x23   :  { %s4240_s26 = smov [#allocation11]   ;;  %s4186_s8 = scalar_lea.hbm %s5046_s5, 2048 }
  0x24   :  { %s50_s28 = sshll.u32 %s4240_s26, 4  ;;  %p4187_p2 = scmp.ne.s32.totalorder %s5046_s5, %s4186_s8  ;;  %s51_s28 = int_to_ptr.vmem [resolvable:$true] %s50_s28 }
  0x25   :  { %p4190_p3 = scmp.lt.u32.totalorder %s4186_s8, %s5046_s5 }
  0x27   :  { %p4192_p4 = pnand %p4190_p3, %p4187_p2 }
  0x29   :  { %4195 = shalt.err (!%p4192_p4)
}
  0x2a   :  { %s4196_s15 = scalar_lea.vmem %s51_s28, 2048  ;;  %p4201_p6 = scmp.lt.s32.totalorder %s51_s28, %s51_s28 }
  0x2b   :  { %p4197_p5 = scmp.ne.s32.totalorder %s51_s28, %s4196_s15  ;;  %p4202_p7 = scmp.lt.s32.totalorder %s4196_s15, %s4196_s15 }
  0x2d   :  { %p4203_p8 = por %p4202_p7, %p4201_p6 }
  0x2f   :  { %p4204_p9 = pnand %p4203_p8, %p4197_p5 }
  0x31   :  { %4207 = shalt.err (!%p4204_p9)
}
  0x32   :  { %s4241_s2 = smov 128   ;;  %s4242_s27 = smov 8  }
  0x33   :  { %56 = dma.hbm_to_vmem [thread:$0]  %s5046_s5, 2048, %s51_s28, [#allocation10], %s4241_s2, %s4241_s2, %s4242_s27  }
  0x34   :  { %4230 = dma.done.wait [#allocation7], 4096  }
  0x35   :  { %4231 = vsyncadd [#allocation7], 4294963200 }
  0x36   :  { %4232 = dma.done.wait [#allocation10], 6144  }
  0x37   :  { %4233 = vsyncadd [#allocation10], 4294961152  ;;  %v5051_v0 = vmov 0   ;;  %v3786_v1 = vld [vmem:[#allocation6 + $0x4] ss:$16 sps:$4 sm:$0xff]   ;;  %v3841_v34 = vld [vmem:[%s5041_s0 + $0x8] sm:$0xff]  }
  0x38   :  { %352 = vmatprep.mubr.bf16.mxu0 %v5051_v0  ;;  %433 = vmatprep.mubr.bf16.mxu1 %v5051_v0  ;;  %v3788_v2 = vld [vmem:[#allocation6] ss:$16 sps:$4 sm:$0xff]   ;;  %v3789_v3 = vld [vmem:[#allocation6 + $0x24] ss:$16 sps:$4 sm:$0xff]   ;;  %v3797_v6 = vld [vmem:[#allocation6 + $0xc] ss:$16 sps:$4 sm:$0xff]  }
  0x39   :  { %3784 = vset.pattern.permute.xlu0 %v5051_v0  ;;  %3785 = vset.pattern.permute.xlu1 %v5051_v0  ;;  %v3791_v4 = vld [vmem:[#allocation6 + $0x20] ss:$16 sps:$4 sm:$0xff]   ;;  %v3792_v5 = vld [vmem:[#allocation6 + $0x44] ss:$16 sps:$4 sm:$0xff]   ;;  %v3800_v7 = vld [vmem:[#allocation6 + $0x8] ss:$16 sps:$4 sm:$0xff]  }
  0x3a   :  { %320 = vmatprep.subr.bf16.mxu0 %v3786_v1  ;;  %v3794_v8 = vld [vmem:[#allocation6 + $0x40] ss:$16 sps:$4 sm:$0xff]   ;;  %401 = vmatprep.subr.bf16.mxu1 %v3797_v6  ;;  %v3795_v9 = vld [vmem:[#allocation6 + $0x64] ss:$16 sps:$4 sm:$0xff]   ;;  %v3803_v10 = vld [vmem:[#allocation6 + $0x2c] ss:$16 sps:$4 sm:$0xff]   ;;  %v112_v6 = vlaneseq }
  0x3b   :  { %321 = vmatpush1.bf16.msra.mxu0 %v3788_v2  ;;  %402 = vmatpush1.bf16.msra.mxu1 %v3800_v7  ;;  %v3806_v11 = vld [vmem:[#allocation6 + $0x28] ss:$16 sps:$4 sm:$0xff]   ;;  %v3799_v12 = vld [vmem:[#allocation6 + $0x60] ss:$16 sps:$4 sm:$0xff]   ;;  %v3801_v13 = vld [vmem:[#allocation6 + $0x84] ss:$16 sps:$4 sm:$0xff]  }
  0x3c   :  { %322 = vmatprep.subr.bf16.mxu0 %v3789_v3  ;;  %403 = vmatprep.subr.bf16.mxu1 %v3803_v10  ;;  %v3809_v14 = vld [vmem:[#allocation6 + $0x4c] ss:$16 sps:$4 sm:$0xff]   ;;  %v3812_v15 = vld [vmem:[#allocation6 + $0x48] ss:$16 sps:$4 sm:$0xff]   ;;  %v3805_v17 = vld [vmem:[#allocation6 + $0x80] ss:$16 sps:$4 sm:$0xff]  }
  0x3d   :  { %v3815_v16 = vld [vmem:[#allocation6 + $0x6c] ss:$16 sps:$4 sm:$0xff]   ;;  %v3807_v18 = vld [vmem:[#allocation6 + $0xa4] ss:$16 sps:$4 sm:$0xff]   ;;  %v3818_v19 = vld [vmem:[#allocation6 + $0x68] ss:$16 sps:$4 sm:$0xff]  }
  0x3e   :  { %v3821_v20 = vld [vmem:[#allocation6 + $0x8c] ss:$16 sps:$4 sm:$0xff]   ;;  %v3811_v21 = vld [vmem:[#allocation6 + $0xa0] ss:$16 sps:$4 sm:$0xff]   ;;  %v3813_v22 = vld [vmem:[#allocation6 + $0xc4] ss:$16 sps:$4 sm:$0xff]  }
  0x3f   :  { %323 = vmatpush1.bf16.msra.mxu0 %v3791_v4  ;;  %404 = vmatpush1.bf16.msra.mxu1 %v3806_v11  ;;  %v3824_v23 = vld [vmem:[#allocation6 + $0x88] ss:$16 sps:$4 sm:$0xff]   ;;  %v3817_v24 = vld [vmem:[#allocation6 + $0xc0] ss:$16 sps:$4 sm:$0xff]   ;;  %v3826_v25 = vld [vmem:[#allocation6 + $0xac] ss:$16 sps:$4 sm:$0xff]  }
  0x40   :  { %324 = vmatprep.subr.bf16.mxu0 %v3792_v5  ;;  %405 = vmatprep.subr.bf16.mxu1 %v3809_v14  ;;  %v3819_v26 = vld [vmem:[#allocation6 + $0xe4] ss:$16 sps:$4 sm:$0xff]   ;;  %v3828_v27 = vld [vmem:[#allocation6 + $0xa8] ss:$16 sps:$4 sm:$0xff]   ;;  %v3829_v28 = vld [vmem:[#allocation6 + $0xcc] ss:$16 sps:$4 sm:$0xff]  }
  0x41   :  { %v3823_v29 = vld [vmem:[#allocation6 + $0xe0] ss:$16 sps:$4 sm:$0xff]   ;;  %v3831_v30 = vld [vmem:[#allocation6 + $0xc8] ss:$16 sps:$4 sm:$0xff]   ;;  %v3832_v31 = vld [vmem:[#allocation6 + $0xec] ss:$16 sps:$4 sm:$0xff]  }
  0x42   :  { %v3825_v32 = vld [vmem:[%s5041_s0] sm:$0xff]   ;;  %v3834_v33 = vld [vmem:[#allocation6 + $0xe8] ss:$16 sps:$4 sm:$0xff]   ;;  %v3845_v39 = vld [vmem:[%s5041_s0 + $0x10] sm:$0xff]   ;;  %v4474_v7 = vshrl.u32 %v112_v6, 7 }
  0x43   :  { %325 = vmatpush1.bf16.msra.mxu0 %v3794_v8  ;;  %406 = vmatpush1.bf16.msra.mxu1 %v3812_v15  ;;  %v4346_v35 = vld [vmem:[#allocation9 + $0x4] ss:$16 sps:$4 sm:$0xff]   ;;  %v4348_v36 = vld [vmem:[#allocation9] ss:$16 sps:$4 sm:$0xff]   ;;  %v3852_v44 = vld [vmem:[%s5041_s0 + $0x18] sm:$0xff]  }
  0x44   :  { %326 = vmatprep.subr.bf16.mxu0 %v3795_v9  ;;  %407 = vmatprep.subr.bf16.mxu1 %v3815_v16  ;;  %v4356_v37 = vld [vmem:[#allocation9 + $0x24] ss:$16 sps:$4 sm:$0xff]   ;;  %v4358_v38 = vld [vmem:[#allocation9 + $0x20] ss:$16 sps:$4 sm:$0xff]   ;;  %v4423_v54 = vld [vmem:[#allocation9 + $0xc] ss:$16 sps:$4 sm:$0xff]  }
  0x45   :  { %v4367_v40 = vld [vmem:[#allocation9 + $0x44] ss:$16 sps:$4 sm:$0xff]   ;;  %v4369_v41 = vld [vmem:[#allocation9 + $0x40] ss:$16 sps:$4 sm:$0xff]   ;;  %v1179_v56 = vld [vmem:[%s5042_s1 + $0x8] sm:$0xff]  ;;  %5055 = vst [vmem:[#allocation16_spill] sm:$0xff] %v4474_v7 }
  0x46   :  { %v4377_v42 = vld [vmem:[#allocation9 + $0x64] ss:$16 sps:$4 sm:$0xff]   ;;  %v4379_v43 = vld [vmem:[#allocation9 + $0x60] ss:$16 sps:$4 sm:$0xff]   ;;  %vm1180_vm1 = vcmp.gt.f32.partialorder %v1179_v56, 0.5  ;;  %v3324_v63 = vld [vmem:[%s5042_s1 + $0x18] sm:$0xff] }
  0x47   :  { %327 = vmatpush1.bf16.msra.mxu0 %v3799_v12  ;;  %408 = vmatpush1.bf16.msra.mxu1 %v3818_v19  ;;  %v4388_v45 = vld [vmem:[#allocation9 + $0x84] ss:$16 sps:$4 sm:$0xff]   ;;  %v4390_v46 = vld [vmem:[#allocation9 + $0x80] ss:$16 sps:$4 sm:$0xff]   ;;  %v1181_v59 = vsel %vm1180_vm1, 1, %v5051_v0  ;;  %vm3332_vm4 = vcmp.gt.f32.partialorder %v3324_v63, 0.5 }
  0x48   :  { %328 = vmatprep.subr.bf16.mxu0 %v3801_v13  ;;  %409 = vmatprep.subr.bf16.mxu1 %v3821_v20  ;;  %v4398_v47 = vld [vmem:[#allocation9 + $0xa0] ss:$16 sps:$4 sm:$0xff]   ;;  %v4400_v48 = vld [vmem:[#allocation9 + $0xa4] ss:$16 sps:$4 sm:$0xff]   ;;  %v3326_v1 = vld [vmem:[%s5042_s1 + $0x28] sm:$0xff]  ;;  %v4463_v2 = vsel %vm3332_vm4, 1, %v5051_v0 }
  0x49   :  { %v4402_v49 = vld [vmem:[#allocation9 + $0xc4] ss:$16 sps:$4 sm:$0xff]   ;;  %v3859_v50 = vld [vmem:[%s5041_s0 + $0x20] ss:$0 sps:$4 sm:$0xff]   ;;  %vm3334_vm5 = vcmp.gt.f32.partialorder %v3326_v1, 0.5  ;;  %v3328_v3 = vld [vmem:[%s5042_s1 + $0x38] sm:$0xff] }
  0x4a   :  { %v4410_v51 = vld [vmem:[#allocation9 + $0xc0] ss:$16 sps:$4 sm:$0xff]   ;;  %v4414_v52 = vld [vmem:[#allocation9 + $0xe4] ss:$16 sps:$4 sm:$0xff]   ;;  %v4470_v4 = vsel %vm3334_vm5, 1, %v5051_v0  ;;  %vm3336_vm6 = vcmp.gt.f32.partialorder %v3328_v3, 0.5 }
  0x4b   :  { %329 = vmatpush1.bf16.msra.mxu0 %v3805_v17  ;;  %410 = vmatpush1.bf16.msra.mxu1 %v3824_v23  ;;  %v4419_v53 = vld [vmem:[#allocation9 + $0xe0] ss:$16 sps:$4 sm:$0xff]   ;;  %v3344_v5 = vsel %vm3336_vm6, 1, %v5051_v0  ;;  %v5050_v8 = vsub.s32 0, %v4474_v7  ;;  %v5049_v10 = vsub.s32 1, %v4474_v7  ;;  %v126_v13 = vsub.s32 3, %v4474_v7 }
  0x4c   :  { %330 = vmatprep.subr.bf16.mxu0 %v3807_v18  ;;  %411 = vmatprep.subr.bf16.mxu1 %v3826_v25  ;;  %v857_v55 = vld [vmem:[%s5042_s1] sm:$0xff]  ;;  %v2798_v60 = vld [vmem:[%s5042_s1 + $0x30] sm:$0xff]  ;;  %v122_v23 = vsub.s32 2, %v4474_v7 }
  0x4d   :  { %vm858_vm0 = vcmp.gt.f32.partialorder %v857_v55, 0.5  ;;  %v2151_v58 = vld [vmem:[%s5042_s1 + $0x20] sm:$0xff]  ;;  %vm2799_vm3 = vcmp.gt.f32.partialorder %v2798_v60, 0.5 }
  0x4e   :  { %v4438_v57 = vsel %vm858_vm0, 1, %v5051_v0  ;;  %vm2152_vm2 = vcmp.gt.f32.partialorder %v2151_v58, 0.5  ;;  %v4453_v62 = vsel %vm2799_vm3, 1, %v5051_v0  ;;  %v110_v9 = vld [vmem:[%s5045_s4] sm:$0xf] }
  0x4f   :  { %331 = vmatpush1.bf16.msra.mxu0 %v3811_v21  ;;  %412 = vmatpush1.bf16.msra.mxu1 %v3828_v27  ;;  %v4449_v61 = vsel %vm2152_vm2, 1, %v5051_v0  ;;  %v4483_v11 = vrot.slane %v110_v9, %v5050_v8  ;;  %v4487_v12 = vrot.slane %v110_v9, %v5049_v10  ;;  %v4496_v21 = vrot.slane %v110_v9, %v126_v13  ;;  %v4519_v13 = vld [vmem:[#allocation9 + $0x28] ss:$16 sps:$4 sm:$0xff]  }
  0x50   :  { %332 = vmatprep.subr.bf16.mxu0 %v3813_v22  ;;  %413 = vmatprep.subr.bf16.mxu1 %v3829_v28  ;;  %v4502_v28 = vrot.slane %v110_v9, %v122_v23  ;;  %v4516_v9 = vld [vmem:[#allocation9 + $0x2c] ss:$16 sps:$4 sm:$0xff]  }
  0x51   :  { %861 = vperm.xlu0 %3784, %v4438_v57   ;;  %v4541_v23 = vld [vmem:[#allocation9 + $0xac] ss:$16 sps:$4 sm:$0xff]  }
  0x53   :  { %333 = vmatpush1.bf16.msra.mxu0 %v3817_v24  ;;  %414 = vmatpush1.bf16.msra.mxu1 %v3831_v30 }
  0x54   :  { %334 = vmatprep.subr.bf16.mxu0 %v3819_v26  ;;  %415 = vmatprep.subr.bf16.mxu1 %v3832_v31 }
  0x55   :  { %1183 = vperm.xlu0 %3784, %v1181_v59  }
  0x57   :  { %335 = vmatpush1.bf16.msra.mxu0 %v3823_v29  ;;  %416 = vmatpush1.bf16.msra.mxu1 %v3834_v33 }
  0x58   :  { %747 = vmatprep.subr.bf16.mxu1 %v4346_v35  ;;  %1069 = vmatprep.subr.bf16.mxu0 %v4346_v35 }
  0x59   :  { %2155 = vperm.xlu0 %3784, %v4449_v61  }
  0x5a   :  { %353 = vmatmul.mubr.bf16.vlgmr.msra.gmra.mrb[0].mxu0 %v3825_v32  ;;  %434 = vmatmul.mubr.bf16.vlgmr.msra.gmra.mrb[0].mxu1 %v3825_v32 }
  0x5b   :  { %362 = vmatprep.mubr.bf16.mxu0 %v5051_v0  ;;  %443 = vmatprep.mubr.bf16.mxu1 %v5051_v0 }
  0x5c   :  { %748 = vmatpush1.bf16.msra.mxu1 %v4348_v36  ;;  %1070 = vmatpush1.bf16.msra.mxu0 %v4348_v36 }
  0x5d   :  { %749 = vmatprep.subr.bf16.mxu1 %v4356_v37  ;;  %1071 = vmatprep.subr.bf16.mxu0 %v4356_v37 }
  0x5e   :  { %2802 = vperm.xlu0 %3784, %v4453_v62  }
  0x60   :  { %750 = vmatpush1.bf16.msra.mxu1 %v4358_v38  ;;  %1072 = vmatpush1.bf16.msra.mxu0 %v4358_v38 }
  0x61   :  { %751 = vmatprep.subr.bf16.mxu1 %v4367_v40  ;;  %1073 = vmatprep.subr.bf16.mxu0 %v4367_v40 }
  0x62   :  { %444 = vmatmul.mubr.bf16.gmra.mrb[4].mxu1 %v3841_v34  ;;  %363 = vmatmul.mubr.bf16.gmra.mrb[4].mxu0 %v3841_v34 }
  0x63   :  { %453 = vmatprep.mubr.bf16.mxu1 %v5051_v0  ;;  %372 = vmatprep.mubr.bf16.mxu0 %v5051_v0 }
  0x64   :  { %752 = vmatpush1.bf16.msra.mxu1 %v4369_v41  ;;  %1074 = vmatpush1.bf16.msra.mxu0 %v4369_v41 }
  0x65   :  { %753 = vmatprep.subr.bf16.mxu1 %v4377_v42  ;;  %1075 = vmatprep.subr.bf16.mxu0 %v4377_v42 }
  0x66   :  { %3349 = vperm.xlu0 %3784, %v1181_v59  }
  0x68   :  { %754 = vmatpush1.bf16.msra.mxu1 %v4379_v43  ;;  %1076 = vmatpush1.bf16.msra.mxu0 %v4379_v43 }
  0x69   :  { %755 = vmatprep.subr.bf16.mxu1 %v4388_v45  ;;  %1077 = vmatprep.subr.bf16.mxu0 %v4388_v45 }
  0x6a   :  { %454 = vmatmul.mubr.bf16.gmra.mrb[8].mxu1 %v3845_v39  ;;  %373 = vmatmul.mubr.bf16.gmra.mrb[8].mxu0 %v3845_v39 }
  0x6b   :  { %463 = vmatprep.mubr.bf16.mxu1 %v5051_v0  ;;  %382 = vmatprep.mubr.bf16.mxu0 %v5051_v0 }
  0x6c   :  { %756 = vmatpush1.bf16.msra.mxu1 %v4390_v46  ;;  %1078 = vmatpush1.bf16.msra.mxu0 %v4390_v46 }
  0x6d   :  { %757 = vmatprep.subr.bf16.mxu1 %v4400_v48  ;;  %1079 = vmatprep.subr.bf16.mxu0 %v4400_v48 }
  0x6e   :  { %3355 = vperm.xlu0 %3784, %v4463_v2  }
  0x70   :  { %758 = vmatpush1.bf16.msra.mxu1 %v4398_v47  ;;  %1080 = vmatpush1.bf16.msra.mxu0 %v4398_v47 }
  0x71   :  { %759 = vmatprep.subr.bf16.mxu1 %v4402_v49  ;;  %1081 = vmatprep.subr.bf16.mxu0 %v4402_v49 }
  0x72   :  { %464 = vmatmul.mubr.bf16.gmra.mrb[12].mxu1 %v3852_v44  ;;  %383 = vmatmul.mubr.bf16.gmra.mrb[12].mxu0 %v3852_v44 }
  0x73   :  { %473 = vmatprep.mubr.bf16.mxu1 %v5051_v0  ;;  %392 = vmatprep.mubr.bf16.mxu0 %v5051_v0 }
  0x74   :  { %760 = vmatpush1.bf16.msra.mxu1 %v4410_v51  ;;  %1082 = vmatpush1.bf16.msra.mxu0 %v4410_v51 }
  0x75   :  { %761 = vmatprep.subr.bf16.mxu1 %v4414_v52  ;;  %1083 = vmatprep.subr.bf16.mxu0 %v4414_v52 }
  0x76   :  { %3361 = vperm.xlu0 %3784, %v4470_v4  }
  0x78   :  { %762 = vmatpush1.bf16.msra.mxu1 %v4419_v53  ;;  %1084 = vmatpush1.bf16.msra.mxu0 %v4419_v53 }
  0x79   :  { %788 = vmatprep.subr.bf16.mxu1 %v4423_v54  ;;  %1394 = vmatprep.subr.bf16.mxu0 %v4346_v35 }
  0x7a   :  { %474 = vmatmul.mubr.bf16.gmra.mrb[16].mxu1 %v3859_v50  ;;  %393 = vmatmul.mubr.bf16.gmra.mrb[16].mxu0 %v3859_v50 }
  0x7b   :  { %779 = vmatprep.mubr.bf16.mxu1 %v5051_v0  ;;  %1101 = vmatprep.mubr.bf16.mxu0 %v5051_v0 }
  0x7c   :  { %3367 = vperm.xlu0 %3784, %v3344_v5   ;;  %v4512_v5 = vld [vmem:[#allocation9 + $0x8] ss:$16 sps:$4 sm:$0xff]  }
 0x12d   :  { %v354_v14 = vpop.f32.mrb[0].mxu0  ;;  %v435_v24 = vpop.f32.mrb[0].mxu1 }
 0x12e   :  { %v355_v15 = vadd.f32 %v354_v14, %v4483_v11  ;;  %v356_v16 = vpop.f32.mrb[1].mxu0  ;;  %v437_v25 = vpop.f32.mrb[1].mxu1  ;;  %v436_v31 = vadd.f32 %v435_v24, %v4502_v28  ;;  %v4523_v14 = vld [vmem:[#allocation9 + $0x4c] ss:$16 sps:$4 sm:$0xff]   ;;  %v4544_v24 = vld [vmem:[#allocation9 + $0xa8] ss:$16 sps:$4 sm:$0xff]  }
 0x12f   :  { %v357_v17 = vadd.f32 %v356_v16, %v4487_v12  ;;  %v4492_v18 = vpop.f32.mrb[2].mxu0  ;;  %v438_v26 = vadd.f32 %v437_v25, %v4496_v21  ;;  %v4500_v27 = vpop.f32.mrb[2].mxu1  ;;  %v4529_v16 = vld [vmem:[#allocation9 + $0x6c] ss:$16 sps:$4 sm:$0xff]  }
 0x130   :  { %v3464_v19 = vmul.f32 -1.442695, %v355_v15  ;;  %v4494_v20 = vpop.f32.mrb[3].mxu0  ;;  %v4504_v29 = vpop.f32.mrb[3].mxu1  ;;  %v4526_v15 = vld [vmem:[#allocation9 + $0x48] ss:$16 sps:$4 sm:$0xff]  }
 0x131   :  { %v3465_v22 = vmul.f32 -1.442695, %v357_v17  ;;  %v3466_v30 = vmul.f32 -1.442695, %v438_v26  ;;  %v4532_v17 = vld [vmem:[#allocation9 + $0x68] ss:$16 sps:$4 sm:$0xff]  }
 0x132   :  { %3998 = vpow2.f32 %v3464_v19  ;;  %v4535_v19 = vld [vmem:[#allocation9 + $0x8c] ss:$16 sps:$4 sm:$0xff]   ;;  %v4550_v26 = vld [vmem:[#allocation9 + $0xc8] ss:$16 sps:$4 sm:$0xff]  }
 0x133   :  { %4000 = vpow2.f32 %v3465_v22  ;;  %v4538_v22 = vld [vmem:[#allocation9 + $0x88] ss:$16 sps:$4 sm:$0xff]   ;;  %v4547_v25 = vld [vmem:[#allocation9 + $0xcc] ss:$16 sps:$4 sm:$0xff]  }
 0x134   :  { %4002 = vpow2.f32 %v3466_v30  ;;  %v4553_v30 = vld [vmem:[#allocation9 + $0xec] ss:$16 sps:$4 sm:$0xff]  }
 0x135   :  { %4004 = vtanh.f32 %v436_v31  ;;  %v4556_v31 = vld [vmem:[#allocation9 + $0xe8] ss:$16 sps:$4 sm:$0xff]  }
 0x13c   :  { %v3999_v32 = vpop.eup %3998 }
 0x13d   :  { %v4001_v33 = vpop.eup %4000  ;;  %v525_v34 = vadd.f32 1.0, %v3999_v32  ;;  %v4570_v32 = vpop.f32.mrb[4].mxu1 }
 0x13e   :  { %v531_v35 = vadd.f32 1.0, %v4001_v33  ;;  %v4003_v39 = vpop.eup %4002  ;;  %v4572_v33 = vpop.f32.mrb[5].mxu1 }
 0x13f   :  { %4006 = vrcp.f32 %v525_v34  ;;  %v4005_v44 = vpop.eup %4004  ;;  %v538_v55 = vadd.f32 1.0, %v4003_v39  ;;  %v4575_v34 = vpop.f32.mrb[6].mxu1 }
 0x140   :  { %4008 = vrcp.f32 %v531_v35  ;;  %5056 = vst [vmem:[#allocation17_spill] sm:$0xff] %v4575_v34  ;;  %v4578_v35 = vpop.f32.mrb[7].mxu1 }
 0x141   :  { %4010 = vrcp.f32 %v538_v55  ;;  %5057 = vst [vmem:[#allocation18_spill] sm:$0xff] %v4578_v35  ;;  %v4582_v39 = vpop.f32.mrb[8].mxu1 }
 0x142   :  { %5058 = vst [vmem:[#allocation19_spill] sm:$0xff] %v4582_v39 }
 0x149   :  { %v4007_v50 = vpop.eup %4006 }
 0x14a   :  { %v4009_v56 = vpop.eup %4008  ;;  %v542_v58 = vmul.f32 %v4007_v50, %v4005_v44  ;;  %v4584_v44 = vpop.f32.mrb[9].mxu1 }
 0x14b   :  { %v541_v59 = vmul.f32 0.0, %v4009_v56  ;;  %v4011_v63 = vpop.eup %4010  ;;  %5059 = vst [vmem:[#allocation20_spill] sm:$0xff] %v4584_v44  ;;  %v4587_v50 = vpop.f32.mrb[10].mxu1  ;;  %v359_v44 = vadd.f32 %v4492_v18, %v4483_v11  ;;  %v440_v18 = vadd.f32 %v4500_v27, %v4502_v28 }
 0x14c   :  { %5060 = vst [vmem:[#allocation21_spill] sm:$0xff] %v4587_v50  ;;  %v4590_v55 = vpop.f32.mrb[11].mxu1 }
 0x14d   :  { %v4507_v60 = vadd.f32 %v542_v58, %v541_v59  ;;  %5061 = vst [vmem:[#allocation22_spill] sm:$0xff] %v4590_v55  ;;  %v4594_v56 = vpop.f32.mrb[12].mxu1 }
 0x14e   :  { %5062 = vst [vmem:[#allocation23_spill] sm:$0xff] %v4594_v56  ;;  %v4596_v58 = vpop.f32.mrb[13].mxu1 }
 0x14f   :  { %4012 = vtanh.f32 %v4507_v60  ;;  %5063 = vst [vmem:[#allocation24_spill] sm:$0xff] %v4596_v58  ;;  %v4598_v59 = vpop.f32.mrb[14].mxu1 }
 0x150   :  { %5064 = vst [vmem:[#allocation25_spill] sm:$0xff] %v4598_v59 }
 0x159   :  { %v4013_v1 = vpop.eup %4012 }
 0x15a   :  { %v4510_v3 = vmul.f32 %v4013_v1, %v4011_v63  ;;  %v4600_v63 = vpop.f32.mrb[15].mxu1  ;;  %v4602_v1 = vpop.f32.mrb[4].mxu0 }
 0x15b   :  { %5065 = vst [vmem:[#allocation26_spill] sm:$0xff] %v4600_v63 }
 0x15c   :  { %v554_v6 = vpack.c.bf16 %v4510_v3, %v4510_v3 }
 0x15e   :  { %780 = vmatmul.mubr.bf16.vlgmr.msra.gmra.mrb[20].mxu1 %v554_v6 }
 0x15f   :  { %789 = vmatpush1.bf16.msra.mxu1 %v4512_v5  ;;  %820 = vmatprep.mubr.bf16.mxu1 %v5051_v0 }
 0x160   :  { %790 = vmatprep.subr.bf16.mxu1 %v4516_v9 }
 0x163   :  { %791 = vmatpush1.bf16.msra.mxu1 %v4519_v13 }
 0x164   :  { %792 = vmatprep.subr.bf16.mxu1 %v4523_v14 }
 0x167   :  { %793 = vmatpush1.bf16.msra.mxu1 %v4526_v15 }
 0x168   :  { %794 = vmatprep.subr.bf16.mxu1 %v4529_v16 }
 0x16b   :  { %795 = vmatpush1.bf16.msra.mxu1 %v4532_v17 }
 0x16c   :  { %796 = vmatprep.subr.bf16.mxu1 %v4535_v19 }
 0x16f   :  { %797 = vmatpush1.bf16.msra.mxu1 %v4538_v22 }
 0x170   :  { %798 = vmatprep.subr.bf16.mxu1 %v4541_v23 }
 0x173   :  { %799 = vmatpush1.bf16.msra.mxu1 %v4544_v24 }
 0x174   :  { %800 = vmatprep.subr.bf16.mxu1 %v4547_v25 }
 0x177   :  { %801 = vmatpush1.bf16.msra.mxu1 %v4550_v26 }
 0x178   :  { %802 = vmatprep.subr.bf16.mxu1 %v4553_v30 }
 0x17b   :  { %803 = vmatpush1.bf16.msra.mxu1 %v4556_v31 }
 0x17c   :  { %1110 = vmatprep.subr.bf16.mxu1 %v4423_v54 }
 0x17e   :  { %821 = vmatmul.mubr.bf16.vlgmr.msra.gmra.mrb[24].mxu1 %v554_v6  ;;  %v4604_v6 = vpop.f32.mrb[5].mxu0 }
 0x17f   :  { %1111 = vmatpush1.bf16.msra.mxu1 %v4512_v5  ;;  %1142 = vmatprep.mubr.bf16.mxu1 %v5051_v0  ;;  %5066 = vst [vmem:[#allocation27_spill] sm:$0xff] %v4604_v6  ;;  %v4606_v10 = vpop.f32.mrb[6].mxu0 }
 0x180   :  { %1112 = vmatprep.subr.bf16.mxu1 %v4516_v9  ;;  %5067 = vst [vmem:[#allocation28_spill] sm:$0xff] %v4606_v10  ;;  %v4608_v8 = vpop.f32.mrb[7].mxu0 }
 0x181   :  { %5068 = vst [vmem:[#allocation29_spill] sm:$0xff] %v4608_v8  ;;  %v4610_v0 = vpop.f32.mrb[8].mxu0 }
 0x182   :  { %5069 = vst [vmem:[#allocation30_spill] sm:$0xff] %v4610_v0  ;;  %v4612_v7 = vpop.f32.mrb[9].mxu0  ;;  %v361_v0 = vadd.f32 %v4494_v20, %v4487_v12  ;;  %v442_v20 = vadd.f32 %v4504_v29, %v4496_v21 }
 0x183   :  { %1113 = vmatpush1.bf16.msra.mxu1 %v4519_v13  ;;  %5070 = vst [vmem:[#allocation31_spill] sm:$0xff] %v4612_v7  ;;  %v4614_v55 = vpop.f32.mrb[10].mxu0 }
 0x184   :  { %1114 = vmatprep.subr.bf16.mxu1 %v4523_v14  ;;  %5071 = vst [vmem:[#allocation32_spill] sm:$0xff] %v4614_v55  ;;  %v4616_v56 = vpop.f32.mrb[11].mxu0 }
 0x185   :  { %5072 = vst [vmem:[#allocation33_spill] sm:$0xff] %v4616_v56  ;;  %v4618_v58 = vpop.f32.mrb[12].mxu0 }
 0x186   :  { %5073 = vst [vmem:[#allocation34_spill] sm:$0xff] %v4618_v58  ;;  %v4620_v59 = vpop.f32.mrb[13].mxu0 }
 0x187   :  { %1115 = vmatpush1.bf16.msra.mxu1 %v4526_v15  ;;  %5074 = vst [vmem:[#allocation35_spill] sm:$0xff] %v4620_v59  ;;  %v4622_v63 = vpop.f32.mrb[14].mxu0 }
 0x188   :  { %1116 = vmatprep.subr.bf16.mxu1 %v4529_v16  ;;  %5075 = vst [vmem:[#allocation36_spill] sm:$0xff] %v4622_v63  ;;  %v4624_v50 = vpop.f32.mrb[15].mxu0 }
 0x189   :  { %5076 = vst [vmem:[#allocation37_spill] sm:$0xff] %v4624_v50 }
 0x18b   :  { %1117 = vmatpush1.bf16.msra.mxu1 %v4532_v17 }
 0x18c   :  { %1118 = vmatprep.subr.bf16.mxu1 %v4535_v19 }
 0x18f   :  { %1119 = vmatpush1.bf16.msra.mxu1 %v4538_v22 }
 0x190   :  { %1120 = vmatprep.subr.bf16.mxu1 %v4541_v23 }
 0x193   :  { %1121 = vmatpush1.bf16.msra.mxu1 %v4544_v24 }
 0x194   :  { %1122 = vmatprep.subr.bf16.mxu1 %v4547_v25 }
 0x197   :  { %1123 = vmatpush1.bf16.msra.mxu1 %v4550_v26 }
 0x198   :  { %1124 = vmatprep.subr.bf16.mxu1 %v4553_v30 }
 0x19b   :  { %1125 = vmatpush1.bf16.msra.mxu1 %v4556_v31 }
 0x19c   :  { %1435 = vmatprep.subr.bf16.mxu1 %v4423_v54 }
 0x231   :  { %v781_v39 = vpop.f32.mrb[20].mxu1 }
 0x232   :  { %v829_v7 = vadd.f32 %v781_v39, %v359_v44  ;;  %v783_v8 = vpop.f32.mrb[21].mxu1 }
 0x233   :  { %v830_v55 = vadd.f32 %v783_v8, %v361_v0  ;;  %v785_v35 = vpop.f32.mrb[22].mxu1 }
 0x234   :  { %v786_v56 = vpop.f32.mrb[23].mxu1  ;;  %v3499_v58 = vmul.f32 -1.442695, %v829_v7 }
 0x235   :  { %v3500_v10 = vmul.f32 -1.442695, %v830_v55 }
 0x237   :  { %4014 = vpow2.f32 %v3500_v10 }
 0x238   :  { %4016 = vpow2.f32 %v3499_v58  ;;  %v862_v58 = vpop.permute.xlu0 %861 }
 0x239   :  { %vm863_vm7 = vcmp.eq.s32.totalorder %v862_v58, 1 }
 0x241   :  { %v4015_v59 = vpop.eup %4014 }
 0x242   :  { %v4017_v63 = vpop.eup %4016  ;;  %v842_v34 = vadd.f32 1.0, %v4015_v59 }
 0x243   :  { %v836_v50 = vadd.f32 1.0, %v4017_v63 }
 0x244   :  { %4018 = vrcp.f32 %v842_v34 }
 0x245   :  { %4020 = vrcp.f32 %v836_v50 }
 0x24e   :  { %v4019_v44 = vpop.eup %4018 }
 0x24f   :  { %v4021_v55 = vpop.eup %4020  ;;  %v852_v27 = vmul.f32 %v4019_v44, %v4507_v60 }
 0x251   :  { %v822_v6 = vpop.f32.mrb[24].mxu1 }
 0x252   :  { %v831_v39 = vadd.f32 %v822_v6, %v440_v18  ;;  %v824_v0 = vpop.f32.mrb[25].mxu1 }
 0x253   :  { %v832_v8 = vadd.f32 %v824_v0, %v442_v20  ;;  %v826_v35 = vpop.f32.mrb[26].mxu1 }
 0x254   :  { %4022 = vtanh.f32 %v831_v39  ;;  %v827_v7 = vpop.f32.mrb[27].mxu1 }
 0x255   :  { %v3501_v10 = vmul.f32 -1.442695, %v832_v8 }
 0x257   :  { %4024 = vpow2.f32 %v3501_v10 }
 0x25e   :  { %v4023_v56 = vpop.eup %4022 }
 0x25f   :  { %v853_v59 = vmul.f32 %v4023_v56, %v4021_v55 }
 0x261   :  { %v4025_v29 = vpop.eup %4024  ;;  %v854_v63 = vadd.f32 %v853_v59, %v852_v27  ;;  %v4709_v59 = vld [vmem:[#allocation9 + $0x4] ss:$16 sps:$4 sm:$0xff]  }
 0x262   :  { %v849_v34 = vadd.f32 1.0, %v4025_v29  ;;  %v4711_v29 = vld [vmem:[#allocation9] ss:$16 sps:$4 sm:$0xff]  }
 0x263   :  { %4026 = vtanh.f32 %v854_v63  ;;  %v4636_v50 = vsel %vm863_vm7, %v854_v63, %v4507_v60  ;;  %v5077_v60 = vmov 0   ;;  %v4717_v63 = vld [vmem:[#allocation9 + $0x20] ss:$16 sps:$4 sm:$0xff]  }
 0x264   :  { %4028 = vrcp.f32 %v849_v34  ;;  %v4731_v34 = vld [vmem:[#allocation9 + $0x60] ss:$16 sps:$4 sm:$0xff]  }
 0x26d   :  { %v4027_v6 = vpop.eup %4026 }
 0x26e   :  { %v4029_v18 = vpop.eup %4028 }
 0x26f   :  { %v856_v20 = vmul.f32 %v4029_v18, %v4027_v6  ;;  %v4739_v6 = vld [vmem:[#allocation9 + $0x84] ss:$16 sps:$4 sm:$0xff]   ;;  %v4741_v18 = vld [vmem:[#allocation9 + $0x8c] ss:$16 sps:$4 sm:$0xff]  }
 0x271   :  { %v4639_v39 = vsel %vm863_vm7, %v856_v20, %v4510_v3  ;;  %v868_v0 = vpack.c.bf16 %v856_v20, %v856_v20  ;;  %v4743_v20 = vld [vmem:[#allocation9 + $0x80] ss:$16 sps:$4 sm:$0xff]  }
 0x272   :  { %v876_v8 = vpack.c.bf16 %v4639_v39, %v4639_v39 }
 0x273   :  { %869 = vst [vmem:[#allocation3] sm:$0xf] %v868_v0  ;;  %v4751_v0 = vld [vmem:[#allocation9 + $0xa4] ss:$16 sps:$4 sm:$0xff]  }
 0x274   :  { %1102 = vmatmul.mubr.bf16.vlgmr.msra.gmra.mrb[20].mxu0 %v876_v8  ;;  %1143 = vmatmul.mubr.bf16.vlgmr.msra.gmra.mrb[28].mxu1 %v876_v8  ;;  %v4753_v8 = vld [vmem:[#allocation9 + $0xac] ss:$16 sps:$4 sm:$0xff]  }
 0x275   :  { %1395 = vmatpush1.bf16.msra.mxu0 %v4348_v36  ;;  %1436 = vmatpush1.bf16.msra.mxu1 %v4512_v5  ;;  %v1504_v36 = vld [vmem:[%s5042_s1 + $0x10] sm:$0xff] }
 0x276   :  { %1396 = vmatprep.subr.bf16.mxu0 %v4356_v37  ;;  %1437 = vmatprep.subr.bf16.mxu1 %v4516_v9  ;;  %vm1505_vm8 = vcmp.gt.f32.partialorder %v1504_v36, 0.5  ;;  %v4755_v36 = vld [vmem:[#allocation9 + $0xa0] ss:$16 sps:$4 sm:$0xff]  }
 0x277   :  { %1426 = vmatprep.mubr.bf16.mxu0 %v5077_v60  ;;  %1467 = vmatprep.mubr.bf16.mxu1 %v5077_v60  ;;  %v1506_v37 = vsel %vm1505_vm8, 1, %v5077_v60 }
 0x278   :  { %1508 = vperm.xlu1 %3785, %v1506_v37  }
 0x279   :  { %1397 = vmatpush1.bf16.msra.mxu0 %v4358_v38  ;;  %1438 = vmatpush1.bf16.msra.mxu1 %v4519_v13  ;;  %v446_v38 = vadd.f32 %v4570_v32, %v4502_v28 }
 0x27a   :  { %1398 = vmatprep.subr.bf16.mxu0 %v4367_v40  ;;  %1439 = vmatprep.subr.bf16.mxu1 %v4523_v14  ;;  %v365_v40 = vadd.f32 %v4602_v1, %v4483_v11 }
 0x27c   :  { %1830 = vperm.xlu1 %3785, %v4463_v2  }
 0x27d   :  { %1399 = vmatpush1.bf16.msra.mxu0 %v4369_v41  ;;  %1440 = vmatpush1.bf16.msra.mxu1 %v4526_v15  ;;  %v448_v41 = vadd.f32 %v4572_v33, %v4496_v21  ;;  %v1184_v33 = vpop.permute.xlu0 %1183 }
 0x27e   :  { %1400 = vmatprep.subr.bf16.mxu0 %v4377_v42  ;;  %1441 = vmatprep.subr.bf16.mxu1 %v4529_v16  ;;  %v5078_v42 = vld [vmem:[#allocation27_spill] sm:$0xff]  ;;  %vm1185_vm9 = vcmp.eq.s32.totalorder %v1184_v33, 1 }
 0x280   :  { %2477 = vperm.xlu1 %3785, %v4470_v4  }
 0x281   :  { %1401 = vmatpush1.bf16.msra.mxu0 %v4379_v43  ;;  %1442 = vmatpush1.bf16.msra.mxu1 %v4532_v17  ;;  %v367_v43 = vadd.f32 %v5078_v42, %v4487_v12  ;;  %v4769_v42 = vld [vmem:[#allocation9 + $0xc8] ss:$16 sps:$4 sm:$0xff]  }
 0x282   :  { %1402 = vmatprep.subr.bf16.mxu0 %v4388_v45  ;;  %1443 = vmatprep.subr.bf16.mxu1 %v4535_v19 }
 0x284   :  { %3346 = vperm.xlu1 %3785, %v4438_v57  }
 0x285   :  { %1403 = vmatpush1.bf16.msra.mxu0 %v4390_v46  ;;  %1444 = vmatpush1.bf16.msra.mxu1 %v4538_v22 }
 0x286   :  { %1404 = vmatprep.subr.bf16.mxu0 %v4400_v48  ;;  %1445 = vmatprep.subr.bf16.mxu1 %v4541_v23 }
 0x288   :  { %3352 = vperm.xlu1 %3785, %v1506_v37   ;;  %v4757_v37 = vld [vmem:[#allocation9 + $0xa8] ss:$16 sps:$4 sm:$0xff]  }
 0x289   :  { %1405 = vmatpush1.bf16.msra.mxu0 %v4398_v47  ;;  %1446 = vmatpush1.bf16.msra.mxu1 %v4544_v24 }
 0x28a   :  { %1406 = vmatprep.subr.bf16.mxu0 %v4402_v49  ;;  %1447 = vmatprep.subr.bf16.mxu1 %v4547_v25 }
 0x28c   :  { %3358 = vperm.xlu1 %3785, %v4449_v61  }
 0x28d   :  { %1407 = vmatpush1.bf16.msra.mxu0 %v4410_v51  ;;  %1448 = vmatpush1.bf16.msra.mxu1 %v4550_v26 }
 0x28e   :  { %1408 = vmatprep.subr.bf16.mxu0 %v4414_v52  ;;  %1449 = vmatprep.subr.bf16.mxu1 %v4553_v30 }
 0x290   :  { %3364 = vperm.xlu1 %3785, %v4453_v62  }
 0x291   :  { %1409 = vmatpush1.bf16.msra.mxu0 %v4419_v53  ;;  %1450 = vmatpush1.bf16.msra.mxu1 %v4556_v31 }
 0x292   :  { %1757 = vmatprep.subr.bf16.mxu1 %v4423_v54  ;;  %1716 = vmatprep.subr.bf16.mxu0 %v4709_v59 }
 0x347   :  { %v1103_v45 = vpop.f32.mrb[20].mxu0  ;;  %v1144_v46 = vpop.f32.mrb[28].mxu1 }
 0x348   :  { %v1151_v47 = vadd.f32 %v1103_v45, %v365_v40  ;;  %v1153_v48 = vadd.f32 %v1144_v46, %v446_v38  ;;  %v1105_v49 = vpop.f32.mrb[21].mxu0  ;;  %v1146_v51 = vpop.f32.mrb[29].mxu1  ;;  %v4763_v38 = vld [vmem:[#allocation9 + $0xc4] ss:$16 sps:$4 sm:$0xff]   ;;  %v4765_v40 = vld [vmem:[#allocation9 + $0xcc] ss:$16 sps:$4 sm:$0xff]  }
 0x349   :  { %v1152_v52 = vadd.f32 %v1105_v49, %v367_v43  ;;  %v1154_v53 = vadd.f32 %v1146_v51, %v448_v41  ;;  %v1107_v54 = vpop.f32.mrb[22].mxu0  ;;  %v1148_v57 = vpop.f32.mrb[30].mxu1  ;;  %v4767_v41 = vld [vmem:[#allocation9 + $0xc0] ss:$16 sps:$4 sm:$0xff]   ;;  %v4775_v43 = vld [vmem:[#allocation9 + $0xe4] ss:$16 sps:$4 sm:$0xff]  }
 0x34a   :  { %v3534_v61 = vmul.f32 -1.442695, %v1151_v47  ;;  %v1108_v62 = vpop.f32.mrb[23].mxu0  ;;  %v1149_v2 = vpop.f32.mrb[31].mxu1  ;;  %v4777_v45 = vld [vmem:[#allocation9 + $0xec] ss:$16 sps:$4 sm:$0xff]  }
 0x34b   :  { %v3535_v4 = vmul.f32 -1.442695, %v1152_v52  ;;  %v3536_v3 = vmul.f32 -1.442695, %v1154_v53  ;;  %v4779_v46 = vld [vmem:[#allocation9 + $0xe0] ss:$16 sps:$4 sm:$0xff]  }
 0x34c   :  { %4030 = vpow2.f32 %v3534_v61  ;;  %v4781_v47 = vld [vmem:[#allocation9 + $0xe8] ss:$16 sps:$4 sm:$0xff]   ;;  %v5080_v51 = vld [vmem:[#allocation28_spill] sm:$0xff]  ;;  %v5081_v53 = vld [vmem:[#allocation18_spill] sm:$0xff] }
 0x34d   :  { %4032 = vpow2.f32 %v3535_v4  ;;  %v369_v52 = vadd.f32 %v5080_v51, %v4483_v11  ;;  %v452_v54 = vadd.f32 %v5081_v53, %v4496_v21  ;;  %v5082_v57 = vld [vmem:[#allocation29_spill] sm:$0xff]  ;;  %v1509_v51 = vpop.permute.xlu1 %1508 }
 0x34e   :  { %4034 = vpow2.f32 %v3536_v3  ;;  %v371_v61 = vadd.f32 %v5082_v57, %v4487_v12  ;;  %vm1510_vm10 = vcmp.eq.s32.totalorder %v1509_v51, 1 }
 0x34f   :  { %4036 = vtanh.f32 %v1153_v48  ;;  %v5079_v48 = vld [vmem:[#allocation17_spill] sm:$0xff] }
 0x350   :  { %v450_v49 = vadd.f32 %v5079_v48, %v4502_v28 }
 0x356   :  { %v4031_v16 = vpop.eup %4030 }
 0x357   :  { %v4033_v17 = vpop.eup %4032  ;;  %v1158_v19 = vadd.f32 1.0, %v4031_v16 }
 0x358   :  { %v1164_v22 = vadd.f32 1.0, %v4033_v17  ;;  %v4035_v23 = vpop.eup %4034 }
 0x359   :  { %4038 = vrcp.f32 %v1158_v19  ;;  %v4037_v24 = vpop.eup %4036  ;;  %v1171_v31 = vadd.f32 1.0, %v4035_v23 }
 0x35a   :  { %4040 = vrcp.f32 %v1164_v22 }
 0x35b   :  { %4042 = vrcp.f32 %v1171_v31 }
 0x363   :  { %v4039_v25 = vpop.eup %4038 }
 0x364   :  { %v4041_v26 = vpop.eup %4040  ;;  %v1175_v30 = vmul.f32 %v4039_v25, %v4037_v24 }
 0x365   :  { %v1174_v32 = vmul.f32 %v4041_v26, %v4636_v50  ;;  %v4043_v7 = vpop.eup %4042 }
 0x367   :  { %v1176_v1 = vadd.f32 %v1175_v30, %v1174_v32 }
 0x369   :  { %4044 = vtanh.f32 %v1176_v1  ;;  %v4695_v35 = vsel %vm1185_vm9, %v1176_v1, %v4636_v50  ;;  %v4733_v50 = vld [vmem:[#allocation9 + $0x68] ss:$16 sps:$4 sm:$0xff]  }
 0x373   :  { %v4045_v10 = vpop.eup %4044 }
 0x374   :  { %v1178_v44 = vmul.f32 %v4045_v10, %v4043_v7 }
 0x376   :  { %v4698_v55 = vsel %vm1185_vm9, %v1178_v44, %v4639_v39  ;;  %v1190_v56 = vpack.c.bf16 %v1178_v44, %v1178_v44  ;;  %v4745_v39 = vld [vmem:[#allocation9 + $0x88] ss:$16 sps:$4 sm:$0xff]  }
 0x377   :  { %v1201_v58 = vpack.c.bf16 %v4698_v55, %v4698_v55 }
 0x378   :  { %v1192_v27 = vrot.slane %v1190_v56, 4 }
 0x379   :  { %1427 = vmatmul.mubr.bf16.vlgmr.msra.gmra.mrb[24].mxu0 %v1201_v58  ;;  %1468 = vmatmul.mubr.bf16.vlgmr.msra.gmra.mrb[32].mxu1 %v1201_v58 }
 0x37a   :  { %1194 = vst [vmem:[#allocation3] sm:$0xf0] %v1192_v27  ;;  %1758 = vmatpush1.bf16.msra.mxu1 %v4512_v5  ;;  %1748 = vmatprep.mubr.bf16.mxu0 %v5077_v60  ;;  %v4715_v5 = vld [vmem:[#allocation9 + $0x24] ss:$16 sps:$4 sm:$0xff]  }
 0x37b   :  { %1759 = vmatprep.subr.bf16.mxu1 %v4516_v9  ;;  %1789 = vmatprep.mubr.bf16.mxu1 %v5077_v60  ;;  %v4721_v9 = vld [vmem:[#allocation9 + $0x44] ss:$16 sps:$4 sm:$0xff]  }
 0x37c   :  { %1717 = vmatpush1.bf16.msra.mxu0 %v4711_v29 }
 0x37d   :  { %1718 = vmatprep.subr.bf16.mxu0 %v4715_v5 }
 0x37e   :  { %1760 = vmatpush1.bf16.msra.mxu1 %v4519_v13  ;;  %v4723_v13 = vld [vmem:[#allocation9 + $0x40] ss:$16 sps:$4 sm:$0xff]  }
 0x37f   :  { %1761 = vmatprep.subr.bf16.mxu1 %v4523_v14  ;;  %v4727_v14 = vld [vmem:[#allocation9 + $0x64] ss:$16 sps:$4 sm:$0xff]  }
 0x380   :  { %1719 = vmatpush1.bf16.msra.mxu0 %v4717_v63 }
 0x381   :  { %1720 = vmatprep.subr.bf16.mxu0 %v4721_v9 }
 0x382   :  { %1762 = vmatpush1.bf16.msra.mxu1 %v4526_v15  ;;  %v4729_v15 = vld [vmem:[#allocation9 + $0x6c] ss:$16 sps:$4 sm:$0xff]  }
 0x383   :  { %1763 = vmatprep.subr.bf16.mxu1 %v4729_v15 }
 0x384   :  { %1721 = vmatpush1.bf16.msra.mxu0 %v4723_v13 }
 0x385   :  { %1722 = vmatprep.subr.bf16.mxu0 %v4727_v14 }
 0x386   :  { %1764 = vmatpush1.bf16.msra.mxu1 %v4733_v50 }
 0x387   :  { %1765 = vmatprep.subr.bf16.mxu1 %v4741_v18 }
 0x388   :  { %1723 = vmatpush1.bf16.msra.mxu0 %v4731_v34 }
 0x389   :  { %1724 = vmatprep.subr.bf16.mxu0 %v4739_v6 }
 0x38a   :  { %1766 = vmatpush1.bf16.msra.mxu1 %v4745_v39 }
 0x38b   :  { %1767 = vmatprep.subr.bf16.mxu1 %v4753_v8 }
 0x38c   :  { %1725 = vmatpush1.bf16.msra.mxu0 %v4743_v20 }
 0x38d   :  { %1726 = vmatprep.subr.bf16.mxu0 %v4751_v0 }
 0x38e   :  { %1768 = vmatpush1.bf16.msra.mxu1 %v4757_v37 }
 0x38f   :  { %1769 = vmatprep.subr.bf16.mxu1 %v4765_v40 }
 0x390   :  { %1727 = vmatpush1.bf16.msra.mxu0 %v4755_v36 }
 0x391   :  { %1728 = vmatprep.subr.bf16.mxu0 %v4763_v38 }
 0x392   :  { %1770 = vmatpush1.bf16.msra.mxu1 %v4769_v42 }
 0x393   :  { %1771 = vmatprep.subr.bf16.mxu1 %v4777_v45 }
 0x394   :  { %1729 = vmatpush1.bf16.msra.mxu0 %v4767_v41 }
 0x395   :  { %1730 = vmatprep.subr.bf16.mxu0 %v4775_v43 }
 0x396   :  { %1772 = vmatpush1.bf16.msra.mxu1 %v4781_v47 }
 0x398   :  { %1731 = vmatpush1.bf16.msra.mxu0 %v4779_v46 }
 0x399   :  { %2041 = vmatprep.subr.bf16.mxu0 %v4709_v59 }
 0x44c   :  { %v1428_v62 = vpop.f32.mrb[24].mxu0  ;;  %v1469_v2 = vpop.f32.mrb[32].mxu1 }
 0x44d   :  { %v1476_v4 = vadd.f32 %v1428_v62, %v369_v52  ;;  %v1478_v3 = vadd.f32 %v1469_v2, %v450_v49  ;;  %v1430_v16 = vpop.f32.mrb[25].mxu0  ;;  %v1471_v17 = vpop.f32.mrb[33].mxu1 }
 0x44e   :  { %v1477_v19 = vadd.f32 %v1430_v16, %v371_v61  ;;  %v1479_v22 = vadd.f32 %v1471_v17, %v452_v54  ;;  %v1432_v23 = vpop.f32.mrb[26].mxu0  ;;  %v1473_v24 = vpop.f32.mrb[34].mxu1  ;;  %v4829_v16 = vld [vmem:[#allocation9 + $0x2c] ss:$16 sps:$4 sm:$0xff]   ;;  %v4831_v17 = vld [vmem:[#allocation9 + $0x28] ss:$16 sps:$4 sm:$0xff]  }
 0x44f   :  { %v3569_v25 = vmul.f32 -1.442695, %v1476_v4  ;;  %v1433_v26 = vpop.f32.mrb[27].mxu0  ;;  %v1474_v30 = vpop.f32.mrb[35].mxu1  ;;  %v5083_v23 = vld [vmem:[#allocation19_spill] sm:$0xff] }
 0x450   :  { %v3570_v31 = vmul.f32 -1.442695, %v1477_v19  ;;  %v3571_v32 = vmul.f32 -1.442695, %v1479_v22  ;;  %v4835_v19 = vld [vmem:[#allocation9 + $0x4c] ss:$16 sps:$4 sm:$0xff]   ;;  %v456_v24 = vadd.f32 %v5083_v23, %v4502_v28 }
 0x451   :  { %4046 = vpow2.f32 %v3569_v25  ;;  %v4837_v22 = vld [vmem:[#allocation9 + $0x48] ss:$16 sps:$4 sm:$0xff]   ;;  %v5084_v25 = vld [vmem:[#allocation30_spill] sm:$0xff]  ;;  %v5085_v30 = vld [vmem:[#allocation20_spill] sm:$0xff] }
 0x452   :  { %4048 = vpow2.f32 %v3570_v31  ;;  %v375_v26 = vadd.f32 %v5084_v25, %v4483_v11  ;;  %v458_v31 = vadd.f32 %v5085_v30, %v4496_v21 }
 0x453   :  { %4050 = vpow2.f32 %v3571_v32  ;;  %v5086_v32 = vld [vmem:[#allocation31_spill] sm:$0xff] }
 0x454   :  { %4052 = vtanh.f32 %v1478_v3 }
 0x45b   :  { %v4047_v33 = vpop.eup %4046 }
 0x45c   :  { %v4049_v1 = vpop.eup %4048  ;;  %v1483_v7 = vadd.f32 1.0, %v4047_v33  ;;  %v377_v33 = vadd.f32 %v5086_v32, %v4487_v12 }
 0x45d   :  { %v1489_v10 = vadd.f32 1.0, %v4049_v1  ;;  %v4051_v44 = vpop.eup %4050 }
 0x45e   :  { %4054 = vrcp.f32 %v1483_v7  ;;  %v4053_v56 = vpop.eup %4052  ;;  %v1496_v48 = vadd.f32 1.0, %v4051_v44 }
 0x45f   :  { %4056 = vrcp.f32 %v1489_v10 }
 0x460   :  { %4058 = vrcp.f32 %v1496_v48 }
 0x468   :  { %v4055_v58 = vpop.eup %4054 }
 0x469   :  { %v4057_v27 = vpop.eup %4056  ;;  %v1500_v49 = vmul.f32 %v4055_v58, %v4053_v56 }
 0x46a   :  { %v1499_v52 = vmul.f32 %v4057_v27, %v4695_v35  ;;  %v4059_v57 = vpop.eup %4058 }
 0x46c   :  { %v1501_v53 = vadd.f32 %v1500_v49, %v1499_v52 }
 0x46e   :  { %4060 = vtanh.f32 %v1501_v53  ;;  %v4798_v54 = vsel %vm1510_vm10, %v1501_v53, %v4695_v35  ;;  %v4823_v35 = vld [vmem:[#allocation9 + $0xc] ss:$16 sps:$4 sm:$0xff]  }
 0x46f   :  { %2082 = vmatprep.subr.bf16.mxu1 %v4823_v35 }
 0x478   :  { %v4061_v61 = vpop.eup %4060 }
 0x479   :  { %v1503_v62 = vmul.f32 %v4061_v61, %v4059_v57 }
 0x47b   :  { %v4801_v2 = vsel %vm1510_vm10, %v1503_v62, %v4698_v55  ;;  %v1515_v4 = vpack.c.bf16 %v1503_v62, %v1503_v62  ;;  %v4825_v55 = vld [vmem:[#allocation9 + $0x8] ss:$16 sps:$4 sm:$0xff]  }
 0x47c   :  { %v1523_v3 = vpack.c.bf16 %v4801_v2, %v4801_v2 }
 0x47d   :  { %1516 = vst [vmem:[#allocation3 + $0x8] sm:$0xf] %v1515_v4 }
 0x47e   :  { %1749 = vmatmul.mubr.bf16.vlgmr.msra.gmra.mrb[28].mxu0 %v1523_v3  ;;  %1790 = vmatmul.mubr.bf16.vlgmr.msra.gmra.mrb[36].mxu1 %v1523_v3 }
 0x47f   :  { %2042 = vmatpush1.bf16.msra.mxu0 %v4711_v29  ;;  %2073 = vmatprep.mubr.bf16.mxu0 %v5077_v60 }
 0x480   :  { %2043 = vmatprep.subr.bf16.mxu0 %v4715_v5  ;;  %2114 = vmatprep.mubr.bf16.mxu1 %v5077_v60 }
 0x481   :  { %2083 = vmatpush1.bf16.msra.mxu1 %v4825_v55 }
 0x482   :  { %2084 = vmatprep.subr.bf16.mxu1 %v4829_v16 }
 0x483   :  { %2044 = vmatpush1.bf16.msra.mxu0 %v4717_v63 }
 0x484   :  { %2045 = vmatprep.subr.bf16.mxu0 %v4721_v9 }
 0x485   :  { %2085 = vmatpush1.bf16.msra.mxu1 %v4831_v17 }
 0x486   :  { %2086 = vmatprep.subr.bf16.mxu1 %v4835_v19 }
 0x487   :  { %2046 = vmatpush1.bf16.msra.mxu0 %v4723_v13 }
 0x488   :  { %2047 = vmatprep.subr.bf16.mxu0 %v4727_v14 }
 0x489   :  { %2087 = vmatpush1.bf16.msra.mxu1 %v4837_v22 }
 0x48a   :  { %2088 = vmatprep.subr.bf16.mxu1 %v4729_v15 }
 0x48b   :  { %2048 = vmatpush1.bf16.msra.mxu0 %v4731_v34 }
 0x48c   :  { %2049 = vmatprep.subr.bf16.mxu0 %v4739_v6 }
 0x48d   :  { %2089 = vmatpush1.bf16.msra.mxu1 %v4733_v50 }
 0x48e   :  { %2090 = vmatprep.subr.bf16.mxu1 %v4741_v18 }
 0x48f   :  { %2050 = vmatpush1.bf16.msra.mxu0 %v4743_v20 }
 0x490   :  { %2051 = vmatprep.subr.bf16.mxu0 %v4751_v0 }
 0x491   :  { %2091 = vmatpush1.bf16.msra.mxu1 %v4745_v39 }
 0x492   :  { %2092 = vmatprep.subr.bf16.mxu1 %v4753_v8 }
 0x493   :  { %2052 = vmatpush1.bf16.msra.mxu0 %v4755_v36 }
 0x494   :  { %2053 = vmatprep.subr.bf16.mxu0 %v4763_v38 }
 0x495   :  { %2093 = vmatpush1.bf16.msra.mxu1 %v4757_v37 }
 0x496   :  { %2094 = vmatprep.subr.bf16.mxu1 %v4765_v40 }
 0x497   :  { %2054 = vmatpush1.bf16.msra.mxu0 %v4767_v41 }
 0x498   :  { %2055 = vmatprep.subr.bf16.mxu0 %v4775_v43 }
 0x499   :  { %2095 = vmatpush1.bf16.msra.mxu1 %v4769_v42 }
 0x49a   :  { %2096 = vmatprep.subr.bf16.mxu1 %v4777_v45 }
 0x49b   :  { %2056 = vmatpush1.bf16.msra.mxu0 %v4779_v46 }
 0x49c   :  { %2363 = vmatprep.subr.bf16.mxu0 %v4709_v59 }
 0x49d   :  { %2097 = vmatpush1.bf16.msra.mxu1 %v4781_v47 }
 0x49e   :  { %2404 = vmatprep.subr.bf16.mxu1 %v4823_v35 }
 0x551   :  { %v1750_v1 = vpop.f32.mrb[28].mxu0  ;;  %v1791_v7 = vpop.f32.mrb[36].mxu1 }
 0x552   :  { %v1798_v10 = vadd.f32 %v1750_v1, %v375_v26  ;;  %v1800_v44 = vadd.f32 %v1791_v7, %v456_v24  ;;  %v1752_v56 = vpop.f32.mrb[29].mxu0  ;;  %v1793_v58 = vpop.f32.mrb[37].mxu1 }
 0x553   :  { %v1799_v27 = vadd.f32 %v1752_v56, %v377_v33  ;;  %v1801_v48 = vadd.f32 %v1793_v58, %v458_v31  ;;  %v1754_v49 = vpop.f32.mrb[30].mxu0  ;;  %v1795_v51 = vpop.f32.mrb[38].mxu1 }
 0x554   :  { %v3604_v52 = vmul.f32 -1.442695, %v1798_v10  ;;  %v1755_v53 = vpop.f32.mrb[31].mxu0  ;;  %v1796_v57 = vpop.f32.mrb[39].mxu1 }
 0x555   :  { %v3605_v61 = vmul.f32 -1.442695, %v1799_v27  ;;  %v3606_v62 = vmul.f32 -1.442695, %v1801_v48  ;;  %v1831_v7 = vpop.permute.xlu1 %1830  ;;  %v5088_v53 = vld [vmem:[#allocation32_spill] sm:$0xff] }
 0x556   :  { %4062 = vpow2.f32 %v3604_v52  ;;  %vm1832_vm11 = vcmp.eq.s32.totalorder %v1831_v7, 1  ;;  %v379_v57 = vadd.f32 %v5088_v53, %v4483_v11 }
 0x557   :  { %4064 = vpow2.f32 %v3605_v61  ;;  %v5089_v61 = vld [vmem:[#allocation22_spill] sm:$0xff] }
 0x558   :  { %4066 = vpow2.f32 %v3606_v62  ;;  %v462_v62 = vadd.f32 %v5089_v61, %v4496_v21 }
 0x559   :  { %4068 = vtanh.f32 %v1800_v44 }
 0x560   :  { %v4063_v4 = vpop.eup %4062 }
 0x561   :  { %v4065_v3 = vpop.eup %4064  ;;  %v1805_v23 = vadd.f32 1.0, %v4063_v4  ;;  %v5090_v4 = vld [vmem:[#allocation33_spill] sm:$0xff] }
 0x562   :  { %v1811_v25 = vadd.f32 1.0, %v4065_v3  ;;  %v4067_v24 = vpop.eup %4066  ;;  %v381_v3 = vadd.f32 %v5090_v4, %v4487_v12 }
 0x563   :  { %4070 = vrcp.f32 %v1805_v23  ;;  %v4069_v26 = vpop.eup %4068  ;;  %v1818_v33 = vadd.f32 1.0, %v4067_v24 }
 0x564   :  { %4072 = vrcp.f32 %v1811_v25 }
 0x565   :  { %4074 = vrcp.f32 %v1818_v33 }
 0x56d   :  { %v4071_v30 = vpop.eup %4070 }
 0x56e   :  { %v4073_v31 = vpop.eup %4072  ;;  %v1822_v32 = vmul.f32 %v4071_v30, %v4069_v26 }
 0x56f   :  { %v1821_v1 = vmul.f32 %v4073_v31, %v4798_v54  ;;  %v4075_v44 = vpop.eup %4074 }
 0x571   :  { %v1823_v10 = vadd.f32 %v1822_v32, %v1821_v1 }
 0x573   :  { %4076 = vtanh.f32 %v1823_v10  ;;  %v4862_v56 = vsel %vm1832_vm11, %v1823_v10, %v4798_v54  ;;  %v5087_v54 = vld [vmem:[#allocation21_spill] sm:$0xff] }
 0x57d   :  { %v4077_v58 = vpop.eup %4076 }
 0x57e   :  { %v1825_v27 = vmul.f32 %v4077_v58, %v4075_v44 }
 0x580   :  { %v4865_v48 = vsel %vm1832_vm11, %v1825_v27, %v4801_v2  ;;  %v1837_v49 = vpack.c.bf16 %v1825_v27, %v1825_v27  ;;  %v460_v2 = vadd.f32 %v5087_v54, %v4502_v28 }
 0x581   :  { %v1848_v51 = vpack.c.bf16 %v4865_v48, %v4865_v48 }
 0x582   :  { %v1839_v52 = vrot.slane %v1837_v49, 4 }
 0x583   :  { %2074 = vmatmul.mubr.bf16.vlgmr.msra.gmra.mrb[32].mxu0 %v1848_v51  ;;  %2115 = vmatmul.mubr.bf16.vlgmr.msra.gmra.mrb[40].mxu1 %v1848_v51 }
 0x584   :  { %1841 = vst [vmem:[#allocation3 + $0x8] sm:$0xf0] %v1839_v52  ;;  %2364 = vmatpush1.bf16.msra.mxu0 %v4711_v29  ;;  %2405 = vmatpush1.bf16.msra.mxu1 %v4825_v55 }
 0x585   :  { %2365 = vmatprep.subr.bf16.mxu0 %v4715_v5  ;;  %2406 = vmatprep.subr.bf16.mxu1 %v4829_v16 }
 0x586   :  { %2395 = vmatprep.mubr.bf16.mxu0 %v5077_v60  ;;  %2436 = vmatprep.mubr.bf16.mxu1 %v5077_v60 }
 0x588   :  { %2366 = vmatpush1.bf16.msra.mxu0 %v4717_v63  ;;  %2407 = vmatpush1.bf16.msra.mxu1 %v4831_v17 }
 0x589   :  { %2367 = vmatprep.subr.bf16.mxu0 %v4721_v9  ;;  %2408 = vmatprep.subr.bf16.mxu1 %v4835_v19 }
 0x58c   :  { %2368 = vmatpush1.bf16.msra.mxu0 %v4723_v13  ;;  %2409 = vmatpush1.bf16.msra.mxu1 %v4837_v22 }
 0x58d   :  { %2369 = vmatprep.subr.bf16.mxu0 %v4727_v14  ;;  %2410 = vmatprep.subr.bf16.mxu1 %v4729_v15 }
 0x590   :  { %2370 = vmatpush1.bf16.msra.mxu0 %v4731_v34  ;;  %2411 = vmatpush1.bf16.msra.mxu1 %v4733_v50 }
 0x591   :  { %2371 = vmatprep.subr.bf16.mxu0 %v4739_v6  ;;  %2412 = vmatprep.subr.bf16.mxu1 %v4741_v18 }
 0x594   :  { %2372 = vmatpush1.bf16.msra.mxu0 %v4743_v20  ;;  %2413 = vmatpush1.bf16.msra.mxu1 %v4745_v39 }
 0x595   :  { %2373 = vmatprep.subr.bf16.mxu0 %v4751_v0  ;;  %2414 = vmatprep.subr.bf16.mxu1 %v4753_v8 }
 0x598   :  { %2374 = vmatpush1.bf16.msra.mxu0 %v4755_v36  ;;  %2415 = vmatpush1.bf16.msra.mxu1 %v4757_v37 }
 0x599   :  { %2375 = vmatprep.subr.bf16.mxu0 %v4763_v38  ;;  %2416 = vmatprep.subr.bf16.mxu1 %v4765_v40 }
 0x59c   :  { %2376 = vmatpush1.bf16.msra.mxu0 %v4767_v41  ;;  %2417 = vmatpush1.bf16.msra.mxu1 %v4769_v42 }
 0x59d   :  { %2377 = vmatprep.subr.bf16.mxu0 %v4775_v43  ;;  %2418 = vmatprep.subr.bf16.mxu1 %v4777_v45 }
 0x5a0   :  { %2378 = vmatpush1.bf16.msra.mxu0 %v4779_v46  ;;  %2419 = vmatpush1.bf16.msra.mxu1 %v4781_v47 }
 0x5a1   :  { %2688 = vmatprep.subr.bf16.mxu0 %v4709_v59  ;;  %2729 = vmatprep.subr.bf16.mxu1 %v4823_v35 }
 0x656   :  { %v2075_v23 = vpop.f32.mrb[32].mxu0  ;;  %v2116_v25 = vpop.f32.mrb[40].mxu1 }
 0x657   :  { %v2123_v24 = vadd.f32 %v2075_v23, %v379_v57  ;;  %v2125_v26 = vadd.f32 %v2116_v25, %v460_v2  ;;  %v2077_v30 = vpop.f32.mrb[33].mxu0  ;;  %v2118_v59 = vpop.f32.mrb[41].mxu1 }
 0x658   :  { %v2124_v31 = vadd.f32 %v2077_v30, %v381_v3  ;;  %v2126_v32 = vadd.f32 %v2118_v59, %v462_v62  ;;  %v2079_v33 = vpop.f32.mrb[34].mxu0  ;;  %v2120_v1 = vpop.f32.mrb[42].mxu1 }
 0x659   :  { %v3639_v7 = vmul.f32 -1.442695, %v2123_v24  ;;  %v2080_v10 = vpop.f32.mrb[35].mxu0  ;;  %v2121_v44 = vpop.f32.mrb[43].mxu1 }
 0x65a   :  { %v3640_v58 = vmul.f32 -1.442695, %v2124_v31  ;;  %v3641_v27 = vmul.f32 -1.442695, %v2126_v32  ;;  %v2156_v23 = vpop.permute.xlu0 %2155 }
 0x65b   :  { %4078 = vpow2.f32 %v3639_v7  ;;  %vm2157_vm12 = vcmp.eq.s32.totalorder %v2156_v23, 1  ;;  %v3935_v23 = vld [vmem:[#allocation9] ss:$16 sps:$4 sm:$0xff]  }
 0x65c   :  { %4080 = vpow2.f32 %v3640_v58 }
 0x65d   :  { %4082 = vpow2.f32 %v3641_v27 }
 0x65e   :  { %4084 = vtanh.f32 %v2125_v26 }
 0x665   :  { %v4079_v49 = vpop.eup %4078 }
 0x666   :  { %v4081_v51 = vpop.eup %4080  ;;  %v2130_v52 = vadd.f32 1.0, %v4079_v49  ;;  %v2478_v49 = vpop.permute.xlu1 %2477 }
 0x667   :  { %v2136_v54 = vadd.f32 1.0, %v4081_v51  ;;  %v4083_v2 = vpop.eup %4082  ;;  %vm2479_vm13 = vcmp.eq.s32.totalorder %v2478_v49, 1 }
 0x668   :  { %4086 = vrcp.f32 %v2130_v52  ;;  %v4085_v53 = vpop.eup %4084  ;;  %v2143_v4 = vadd.f32 1.0, %v4083_v2 }
 0x669   :  { %4088 = vrcp.f32 %v2136_v54 }
 0x66a   :  { %4090 = vrcp.f32 %v2143_v4 }
 0x672   :  { %v4087_v57 = vpop.eup %4086 }
 0x673   :  { %v4089_v61 = vpop.eup %4088  ;;  %v2147_v62 = vmul.f32 %v4087_v57, %v4085_v53 }
 0x674   :  { %v2146_v3 = vmul.f32 %v4089_v61, %v4862_v56  ;;  %v4091_v26 = vpop.eup %4090 }
 0x676   :  { %v2148_v25 = vadd.f32 %v2147_v62, %v2146_v3  ;;  %v3937_v3 = vld [vmem:[#allocation9 + $0x4] ss:$16 sps:$4 sm:$0xff]  }
 0x678   :  { %4092 = vtanh.f32 %v2148_v25  ;;  %v4913_v24 = vsel %vm2157_vm12, %v2148_v25, %v4862_v56  ;;  %v3940_v25 = vld [vmem:[#allocation9 + $0x24] ss:$16 sps:$4 sm:$0xff]  }
 0x682   :  { %v4093_v30 = vpop.eup %4092 }
 0x683   :  { %v2150_v59 = vmul.f32 %v4093_v30, %v4091_v26  ;;  %v3941_v26 = vld [vmem:[#allocation9 + $0x40] ss:$16 sps:$4 sm:$0xff]  }
 0x684   :  { %v3944_v30 = vld [vmem:[#allocation9 + $0x60] ss:$16 sps:$4 sm:$0xff]  }
 0x685   :  { %v4916_v31 = vsel %vm2157_vm12, %v2150_v59, %v4865_v48  ;;  %v2162_v32 = vpack.c.bf16 %v2150_v59, %v2150_v59  ;;  %v3949_v59 = vld [vmem:[#allocation9 + $0x6c] ss:$16 sps:$4 sm:$0xff]  }
 0x686   :  { %v2170_v33 = vpack.c.bf16 %v4916_v31, %v4916_v31 }
 0x687   :  { %2163 = vst [vmem:[#allocation3 + $0x10] sm:$0xf] %v2162_v32  ;;  %v3953_v32 = vld [vmem:[#allocation9 + $0x88] ss:$16 sps:$4 sm:$0xff]  }
 0x688   :  { %2396 = vmatmul.mubr.bf16.vlgmr.msra.gmra.mrb[36].mxu0 %v2170_v33  ;;  %2437 = vmatmul.mubr.bf16.vlgmr.msra.gmra.mrb[44].mxu1 %v2170_v33  ;;  %v3958_v33 = vld [vmem:[#allocation9 + $0xa4] ss:$16 sps:$4 sm:$0xff]  }
 0x689   :  { %2689 = vmatpush1.bf16.msra.mxu0 %v4711_v29  ;;  %2730 = vmatpush1.bf16.msra.mxu1 %v4825_v55  ;;  %v5091_v29 = vld [vmem:[#allocation23_spill] sm:$0xff] }
 0x68a   :  { %2690 = vmatprep.subr.bf16.mxu0 %v4715_v5  ;;  %2731 = vmatprep.subr.bf16.mxu1 %v4829_v16  ;;  %v466_v5 = vadd.f32 %v5091_v29, %v4502_v28  ;;  %v3956_v29 = vld [vmem:[#allocation9 + $0xa0] ss:$16 sps:$4 sm:$0xff]  }
 0x68b   :  { %2720 = vmatprep.mubr.bf16.mxu0 %v5077_v60  ;;  %2761 = vmatprep.mubr.bf16.mxu1 %v5077_v60 }
 0x68d   :  { %2691 = vmatpush1.bf16.msra.mxu0 %v4717_v63  ;;  %2732 = vmatpush1.bf16.msra.mxu1 %v4831_v17  ;;  %v5092_v63 = vld [vmem:[#allocation34_spill] sm:$0xff] }
 0x68e   :  { %2692 = vmatprep.subr.bf16.mxu0 %v4721_v9  ;;  %2733 = vmatprep.subr.bf16.mxu1 %v4835_v19  ;;  %v385_v9 = vadd.f32 %v5092_v63, %v4483_v11  ;;  %v3959_v63 = vld [vmem:[#allocation9 + $0xa8] ss:$16 sps:$4 sm:$0xff]  }
 0x691   :  { %2693 = vmatpush1.bf16.msra.mxu0 %v4723_v13  ;;  %2734 = vmatpush1.bf16.msra.mxu1 %v4837_v22  ;;  %v5093_v13 = vld [vmem:[#allocation24_spill] sm:$0xff] }
 0x692   :  { %2694 = vmatprep.subr.bf16.mxu0 %v4727_v14  ;;  %2735 = vmatprep.subr.bf16.mxu1 %v4729_v15  ;;  %v468_v14 = vadd.f32 %v5093_v13, %v4496_v21  ;;  %v5094_v15 = vld [vmem:[#allocation35_spill] sm:$0xff] }
 0x693   :  { %v3967_v13 = vld [vmem:[#allocation9 + $0xcc] ss:$16 sps:$4 sm:$0xff]  }
 0x695   :  { %2695 = vmatpush1.bf16.msra.mxu0 %v4731_v34  ;;  %2736 = vmatpush1.bf16.msra.mxu1 %v4733_v50  ;;  %v387_v34 = vadd.f32 %v5094_v15, %v4487_v12  ;;  %v3965_v15 = vld [vmem:[#allocation9 + $0xc8] ss:$16 sps:$4 sm:$0xff]  }
 0x696   :  { %2696 = vmatprep.subr.bf16.mxu0 %v4739_v6  ;;  %2737 = vmatprep.subr.bf16.mxu1 %v4741_v18 }
 0x699   :  { %2697 = vmatpush1.bf16.msra.mxu0 %v4743_v20  ;;  %2738 = vmatpush1.bf16.msra.mxu1 %v4745_v39 }
 0x69a   :  { %2698 = vmatprep.subr.bf16.mxu0 %v4751_v0  ;;  %2739 = vmatprep.subr.bf16.mxu1 %v4753_v8 }
 0x69d   :  { %2699 = vmatpush1.bf16.msra.mxu0 %v4755_v36  ;;  %2740 = vmatpush1.bf16.msra.mxu1 %v4757_v37 }
 0x69e   :  { %2700 = vmatprep.subr.bf16.mxu0 %v4763_v38  ;;  %2741 = vmatprep.subr.bf16.mxu1 %v4765_v40 }
 0x6a1   :  { %2701 = vmatpush1.bf16.msra.mxu0 %v4767_v41  ;;  %2742 = vmatpush1.bf16.msra.mxu1 %v4769_v42 }
 0x6a2   :  { %2702 = vmatprep.subr.bf16.mxu0 %v4775_v43  ;;  %2743 = vmatprep.subr.bf16.mxu1 %v4777_v45 }
 0x6a5   :  { %2703 = vmatpush1.bf16.msra.mxu0 %v4779_v46  ;;  %2744 = vmatpush1.bf16.msra.mxu1 %v4781_v47 }
 0x6a6   :  { %3051 = vmatprep.subr.bf16.mxu1 %v4823_v35  ;;  %3010 = vmatprep.subr.bf16.mxu0 %v3937_v3 }
 0x75b   :  { %v2397_v50 = vpop.f32.mrb[36].mxu0  ;;  %v2438_v6 = vpop.f32.mrb[44].mxu1 }
 0x75c   :  { %v2445_v18 = vadd.f32 %v2397_v50, %v385_v9  ;;  %v2447_v20 = vadd.f32 %v2438_v6, %v466_v5  ;;  %v2399_v39 = vpop.f32.mrb[37].mxu0  ;;  %v2440_v0 = vpop.f32.mrb[45].mxu1  ;;  %v3961_v5 = vld [vmem:[#allocation9 + $0xac] ss:$16 sps:$4 sm:$0xff]   ;;  %v3964_v9 = vld [vmem:[#allocation9 + $0xc4] ss:$16 sps:$4 sm:$0xff]  }
 0x75d   :  { %v2446_v8 = vadd.f32 %v2399_v39, %v387_v34  ;;  %v2448_v36 = vadd.f32 %v2440_v0, %v468_v14  ;;  %v2401_v37 = vpop.f32.mrb[38].mxu0  ;;  %v2442_v38 = vpop.f32.mrb[46].mxu1  ;;  %v3962_v14 = vld [vmem:[#allocation9 + $0xc0] ss:$16 sps:$4 sm:$0xff]   ;;  %v3970_v34 = vld [vmem:[#allocation9 + $0xe4] ss:$16 sps:$4 sm:$0xff]  }
 0x75e   :  { %v3674_v40 = vmul.f32 -1.442695, %v2445_v18  ;;  %v2402_v41 = vpop.f32.mrb[39].mxu0  ;;  %v2443_v42 = vpop.f32.mrb[47].mxu1  ;;  %v3973_v50 = vld [vmem:[#allocation9 + $0xec] ss:$16 sps:$4 sm:$0xff]  }
 0x75f   :  { %v3675_v43 = vmul.f32 -1.442695, %v2446_v8  ;;  %v3676_v45 = vmul.f32 -1.442695, %v2448_v36  ;;  %v3968_v6 = vld [vmem:[#allocation9 + $0xe0] ss:$16 sps:$4 sm:$0xff]  }
 0x760   :  { %4094 = vpow2.f32 %v3674_v40  ;;  %v3971_v18 = vld [vmem:[#allocation9 + $0xe8] ss:$16 sps:$4 sm:$0xff]   ;;  %v5096_v8 = vld [vmem:[#allocation36_spill] sm:$0xff]  ;;  %v5097_v37 = vld [vmem:[#allocation26_spill] sm:$0xff] }
 0x761   :  { %4096 = vpow2.f32 %v3675_v43  ;;  %v5095_v39 = vld [vmem:[#allocation25_spill] sm:$0xff]  ;;  %v389_v36 = vadd.f32 %v5096_v8, %v4483_v11  ;;  %v472_v38 = vadd.f32 %v5097_v37, %v4496_v21 }
 0x762   :  { %4098 = vpow2.f32 %v3676_v45  ;;  %v470_v0 = vadd.f32 %v5095_v39, %v4502_v28  ;;  %v5098_v40 = vld [vmem:[#allocation37_spill] sm:$0xff] }
 0x763   :  { %4100 = vtanh.f32 %v2447_v20  ;;  %v3976_v20 = vld [vmem:[#allocation11 + $0x4] ss:$8 sps:$4 sm:$0xff]   ;;  %v391_v41 = vadd.f32 %v5098_v40, %v4487_v12 }
 0x764   :  { %v3137_v39 = vld [vmem:[#allocation3 + $0x8] sm:$0xff] }
 0x76a   :  { %v4095_v46 = vpop.eup %4094 }
 0x76b   :  { %v4097_v47 = vpop.eup %4096  ;;  %v2452_v35 = vadd.f32 1.0, %v4095_v46 }
 0x76c   :  { %v2458_v56 = vadd.f32 1.0, %v4097_v47  ;;  %v4099_v48 = vpop.eup %4098 }
 0x76d   :  { %4102 = vrcp.f32 %v2452_v35  ;;  %v4101_v1 = vpop.eup %4100  ;;  %v2465_v58 = vadd.f32 1.0, %v4099_v48 }
 0x76e   :  { %4104 = vrcp.f32 %v2458_v56 }
 0x76f   :  { %4106 = vrcp.f32 %v2465_v58 }
 0x777   :  { %v4103_v7 = vpop.eup %4102 }
 0x778   :  { %v4105_v10 = vpop.eup %4104  ;;  %v2469_v44 = vmul.f32 %v4103_v7, %v4101_v1 }
 0x779   :  { %v2468_v27 = vmul.f32 %v4105_v10, %v4913_v24  ;;  %v4107_v54 = vpop.eup %4106 }
 0x77b   :  { %v2470_v51 = vadd.f32 %v2469_v44, %v2468_v27 }
 0x77d   :  { %4108 = vtanh.f32 %v2470_v51  ;;  %v4963_v52 = vsel %vm2479_vm13, %v2470_v51, %v4913_v24  ;;  %v3938_v24 = vld [vmem:[#allocation9 + $0x20] ss:$16 sps:$4 sm:$0xff]  }
 0x787   :  { %v4109_v2 = vpop.eup %4108 }
 0x788   :  { %v2472_v53 = vmul.f32 %v4109_v2, %v4107_v54 }
 0x78a   :  { %v4966_v57 = vsel %vm2479_vm13, %v2472_v53, %v4916_v31  ;;  %v2484_v61 = vpack.c.bf16 %v2472_v53, %v2472_v53  ;;  %v3955_v31 = vld [vmem:[#allocation9 + $0x8c] ss:$16 sps:$4 sm:$0xff]  }
 0x78b   :  { %v2495_v62 = vpack.c.bf16 %v4966_v57, %v4966_v57 }
 0x78c   :  { %v2486_v4 = vrot.slane %v2484_v61, 4 }
 0x78d   :  { %2721 = vmatmul.mubr.bf16.vlgmr.msra.gmra.mrb[40].mxu0 %v2495_v62  ;;  %2762 = vmatmul.mubr.bf16.vlgmr.msra.gmra.mrb[48].mxu1 %v2495_v62 }
 0x78e   :  { %2488 = vst [vmem:[#allocation3 + $0x10] sm:$0xf0] %v2486_v4  ;;  %3052 = vmatpush1.bf16.msra.mxu1 %v4825_v55  ;;  %3042 = vmatprep.mubr.bf16.mxu0 %v5077_v60  ;;  %v3943_v55 = vld [vmem:[#allocation9 + $0x44] ss:$16 sps:$4 sm:$0xff]  }
 0x78f   :  { %3053 = vmatprep.subr.bf16.mxu1 %v4829_v16  ;;  %3083 = vmatprep.mubr.bf16.mxu1 %v5077_v60  ;;  %v3946_v16 = vld [vmem:[#allocation9 + $0x64] ss:$16 sps:$4 sm:$0xff]  }
 0x790   :  { %3011 = vmatpush1.bf16.msra.mxu0 %v3935_v23 }
 0x791   :  { %3012 = vmatprep.subr.bf16.mxu0 %v3940_v25 }
 0x792   :  { %3054 = vmatpush1.bf16.msra.mxu1 %v4831_v17  ;;  %v3947_v17 = vld [vmem:[#allocation9 + $0x68] ss:$16 sps:$4 sm:$0xff]  }
 0x793   :  { %3055 = vmatprep.subr.bf16.mxu1 %v4835_v19  ;;  %v3952_v19 = vld [vmem:[#allocation9 + $0x84] ss:$16 sps:$4 sm:$0xff]  }
 0x794   :  { %3013 = vmatpush1.bf16.msra.mxu0 %v3938_v24 }
 0x795   :  { %3014 = vmatprep.subr.bf16.mxu0 %v3943_v55  ;;  %v2803_v55 = vpop.permute.xlu0 %2802 }
 0x796   :  { %3056 = vmatpush1.bf16.msra.mxu1 %v4837_v22  ;;  %v3950_v22 = vld [vmem:[#allocation9 + $0x80] ss:$16 sps:$4 sm:$0xff]   ;;  %vm2804_vm14 = vcmp.eq.s32.totalorder %v2803_v55, 1 }
 0x797   :  { %3057 = vmatprep.subr.bf16.mxu1 %v3949_v59 }
 0x798   :  { %3015 = vmatpush1.bf16.msra.mxu0 %v3941_v26 }
 0x799   :  { %3016 = vmatprep.subr.bf16.mxu0 %v3946_v16 }
 0x79a   :  { %3058 = vmatpush1.bf16.msra.mxu1 %v3947_v17 }
 0x79b   :  { %3059 = vmatprep.subr.bf16.mxu1 %v3955_v31 }
 0x79c   :  { %3017 = vmatpush1.bf16.msra.mxu0 %v3944_v30 }
 0x79d   :  { %3018 = vmatprep.subr.bf16.mxu0 %v3952_v19  ;;  %v3974_v19 = vld [vmem:[#allocation11] ss:$8 sps:$4 sm:$0xff]  }
 0x79e   :  { %3060 = vmatpush1.bf16.msra.mxu1 %v3953_v32 }
 0x79f   :  { %3061 = vmatprep.subr.bf16.mxu1 %v3961_v5  ;;  %v3982_v5 = vld [vmem:[#allocation11 + $0x24] ss:$8 sps:$4 sm:$0xff]  }
 0x7a0   :  { %3019 = vmatpush1.bf16.msra.mxu0 %v3950_v22 }
 0x7a1   :  { %3020 = vmatprep.subr.bf16.mxu0 %v3958_v33  ;;  %v3979_v33 = vld [vmem:[#allocation11 + $0x14] ss:$8 sps:$4 sm:$0xff]  }
 0x7a2   :  { %3062 = vmatpush1.bf16.msra.mxu1 %v3959_v63  ;;  %v3985_v63 = vld [vmem:[#allocation11 + $0x34] ss:$8 sps:$4 sm:$0xff]  }
 0x7a3   :  { %3063 = vmatprep.subr.bf16.mxu1 %v3967_v13  ;;  %v3986_v13 = vld [vmem:[#allocation11 + $0x40] ss:$8 sps:$4 sm:$0xff]  }
 0x7a4   :  { %3021 = vmatpush1.bf16.msra.mxu0 %v3956_v29  ;;  %v3977_v29 = vld [vmem:[#allocation11 + $0x10] ss:$8 sps:$4 sm:$0xff]  }
 0x7a5   :  { %3022 = vmatprep.subr.bf16.mxu0 %v3964_v9  ;;  %v3983_v9 = vld [vmem:[#allocation11 + $0x30] ss:$8 sps:$4 sm:$0xff]  }
 0x7a6   :  { %3064 = vmatpush1.bf16.msra.mxu1 %v3965_v15  ;;  %v3989_v15 = vld [vmem:[#allocation11 + $0x50] ss:$8 sps:$4 sm:$0xff]  }
 0x7a7   :  { %3065 = vmatprep.subr.bf16.mxu1 %v3973_v50  ;;  %v3992_v50 = vld [vmem:[#allocation11 + $0x60] ss:$8 sps:$4 sm:$0xff]  }
 0x7a8   :  { %3023 = vmatpush1.bf16.msra.mxu0 %v3962_v14  ;;  %v3991_v14 = vld [vmem:[#allocation11 + $0x54] ss:$8 sps:$4 sm:$0xff]  }
 0x7a9   :  { %3024 = vmatprep.subr.bf16.mxu0 %v3970_v34  ;;  %v3994_v34 = vld [vmem:[#allocation11 + $0x64] ss:$8 sps:$4 sm:$0xff]  }
 0x7aa   :  { %3066 = vmatpush1.bf16.msra.mxu1 %v3971_v18  ;;  %v3995_v18 = vld [vmem:[#allocation11 + $0x70] ss:$8 sps:$4 sm:$0xff]  }
 0x7ac   :  { %3025 = vmatpush1.bf16.msra.mxu0 %v3968_v6  ;;  %v3997_v6 = vld [vmem:[#allocation11 + $0x74] ss:$8 sps:$4 sm:$0xff]  }
 0x7ad   :  { %3248 = vmatprep.subr.bf16.mxu0 %v3976_v20  ;;  %v3136_v20 = vld [vmem:[#allocation3] sm:$0xff] }
 0x860   :  { %v2722_v42 = vpop.f32.mrb[40].mxu0  ;;  %v2763_v43 = vpop.f32.mrb[48].mxu1 }
 0x861   :  { %v2770_v45 = vadd.f32 %v2722_v42, %v389_v36  ;;  %v2772_v46 = vadd.f32 %v2763_v43, %v470_v0  ;;  %v2724_v47 = vpop.f32.mrb[41].mxu0  ;;  %v2765_v35 = vpop.f32.mrb[49].mxu1  ;;  %v3138_v0 = vld [vmem:[#allocation3 + $0x10] sm:$0xff] }
 0x862   :  { %v2771_v56 = vadd.f32 %v2724_v47, %v391_v41  ;;  %v2773_v48 = vadd.f32 %v2765_v35, %v472_v38  ;;  %v2726_v1 = vpop.f32.mrb[42].mxu0  ;;  %v2767_v7 = vpop.f32.mrb[50].mxu1 }
 0x863   :  { %v3709_v10 = vmul.f32 -1.442695, %v2770_v45  ;;  %v2727_v44 = vpop.f32.mrb[43].mxu0  ;;  %v2768_v58 = vpop.f32.mrb[51].mxu1 }
 0x864   :  { %v3710_v27 = vmul.f32 -1.442695, %v2771_v56  ;;  %v3711_v49 = vmul.f32 -1.442695, %v2773_v48  ;;  %v3156_v44 = vld [vmem:[%s5047_s6] sm:$0x3] }
 0x865   :  { %4110 = vpow2.f32 %v3709_v10  ;;  %s4244_s6 = smov [#allocation12]  }
 0x866   :  { %4112 = vpow2.f32 %v3710_v27  ;;  %s3414_s20 = sshll.u32 %s4244_s6, 4  ;;  %s3415_s20 = int_to_ptr.vmem [resolvable:$true] %s3414_s20 }
 0x867   :  { %4114 = vpow2.f32 %v3711_v49  ;;  %s4208_s21 = scalar_lea.vmem %s3415_s20, 2048  ;;  %p4213_p11 = scmp.lt.s32.totalorder %s3415_s20, %s3415_s20 }
 0x868   :  { %4116 = vtanh.f32 %v2772_v46  ;;  %p4209_p10 = scmp.ne.s32.totalorder %s3415_s20, %s4208_s21  ;;  %p4214_p12 = scmp.lt.s32.totalorder %s4208_s21, %s4208_s21 }
 0x86a   :  { %p4215_p13 = por %p4214_p12, %p4213_p11 }
 0x86c   :  { %p4216_p0 = pnand %p4215_p13, %p4209_p10 }
 0x86f   :  { %v4111_v51 = vpop.eup %4110 }
 0x870   :  { %v4113_v54 = vpop.eup %4112  ;;  %v2777_v2 = vadd.f32 1.0, %v4111_v51 }
 0x871   :  { %v2783_v53 = vadd.f32 1.0, %v4113_v54  ;;  %v4115_v61 = vpop.eup %4114  ;;  %v5099_v54 = vld [vmem:[#allocation16_spill] sm:$0xff] }
 0x872   :  { %4118 = vrcp.f32 %v2777_v2  ;;  %v4117_v62 = vpop.eup %4116  ;;  %v2790_v25 = vadd.f32 1.0, %v4115_v61  ;;  %v5101_v61 = vsub.s32 1, %v5099_v54 }
 0x873   :  { %4120 = vrcp.f32 %v2783_v53 }
 0x874   :  { %4122 = vrcp.f32 %v2790_v25 }
 0x87c   :  { %v4119_v4 = vpop.eup %4118 }
 0x87d   :  { %v4121_v3 = vpop.eup %4120  ;;  %v2794_v23 = vmul.f32 %v4119_v4, %v4117_v62  ;;  %v5008_v62 = vrot.slane %v3156_v44, %v5101_v61 }
 0x87e   :  { %v2793_v24 = vmul.f32 %v4121_v3, %v4963_v52  ;;  %v4123_v30 = vpop.eup %4122 }
 0x880   :  { %v2795_v26 = vadd.f32 %v2794_v23, %v2793_v24  ;;  %v3347_v23 = vpop.permute.xlu1 %3346 }
 0x881   :  { %vm3369_vm15 = vcmp.eq.s32.totalorder %v3347_v23, 1 }
 0x882   :  { %4124 = vtanh.f32 %v2795_v26  ;;  %v4987_v16 = vsel %vm2804_vm14, %v2795_v26, %v4963_v52  ;;  %v3980_v52 = vld [vmem:[#allocation11 + $0x20] ss:$8 sps:$4 sm:$0xff]  }
 0x88c   :  { %v4125_v59 = vpop.eup %4124 }
 0x88d   :  { %v2797_v17 = vmul.f32 %v4125_v59, %v4123_v30  ;;  %v3350_v30 = vpop.permute.xlu0 %3349 }
 0x88e   :  { %vm3370_vm0 = vcmp.eq.s32.totalorder %v3350_v30, 1 }
 0x88f   :  { %v2805_v22 = vsel %vm2804_vm14, %v2797_v17, %v4966_v57  ;;  %v2809_v31 = vpack.c.bf16 %v2797_v17, %v2797_v17  ;;  %v3988_v57 = vld [vmem:[#allocation11 + $0x44] ss:$8 sps:$4 sm:$0xff]  }
 0x890   :  { %v2817_v32 = vpack.c.bf16 %v2805_v22, %v2805_v22 }
 0x891   :  { %2810 = vst [vmem:[#allocation3 + $0x18] sm:$0xf] %v2809_v31 }
 0x892   :  { %3043 = vmatmul.mubr.bf16.vlgmr.msra.gmra.mrb[16].mxu0 %v2817_v32  ;;  %3084 = vmatmul.mubr.bf16.vlgmr.msra.gmra.mrb[16].mxu1 %v2817_v32 }
 0x893   :  { %3249 = vmatpush1.bf16.msra.mxu0 %v3974_v19  ;;  %3280 = vmatprep.mubr.bf16.mxu0 %v5077_v60 }
 0x894   :  { %3250 = vmatprep.subr.bf16.mxu0 %v3979_v33 }
 0x897   :  { %3251 = vmatpush1.bf16.msra.mxu0 %v3977_v29  ;;  %v3353_v29 = vpop.permute.xlu1 %3352 }
 0x898   :  { %3252 = vmatprep.subr.bf16.mxu0 %v3982_v5  ;;  %vm3371_vm1 = vcmp.eq.s32.totalorder %v3353_v29, 1 }
 0x89b   :  { %3253 = vmatpush1.bf16.msra.mxu0 %v3980_v52 }
 0x89c   :  { %3254 = vmatprep.subr.bf16.mxu0 %v3985_v63 }
 0x89f   :  { %3255 = vmatpush1.bf16.msra.mxu0 %v3983_v9 }
 0x8a0   :  { %3256 = vmatprep.subr.bf16.mxu0 %v3988_v57 }
 0x8a3   :  { %3257 = vmatpush1.bf16.msra.mxu0 %v3986_v13  ;;  %v3356_v13 = vpop.permute.xlu0 %3355 }
 0x8a4   :  { %3258 = vmatprep.subr.bf16.mxu0 %v3991_v14  ;;  %vm3372_vm2 = vcmp.eq.s32.totalorder %v3356_v13, 1 }
 0x8a7   :  { %3259 = vmatpush1.bf16.msra.mxu0 %v3989_v15 }
 0x8a8   :  { %3260 = vmatprep.subr.bf16.mxu0 %v3994_v34 }
 0x8ab   :  { %3261 = vmatpush1.bf16.msra.mxu0 %v3992_v50 }
 0x8ac   :  { %3262 = vmatprep.subr.bf16.mxu0 %v3997_v6 }
 0x8af   :  { %3263 = vmatpush1.bf16.msra.mxu0 %v3995_v18 }
 0x8b2   :  { %3281 = vmatmul.mubr.bf16.vlgmr.msra.gmra.mrb[44].mxu0 %v3136_v20 }
 0x8b3   :  { %3290 = vmatprep.mubr.bf16.mxu0 %v5077_v60 }
 0x8ba   :  { %3291 = vmatmul.mubr.bf16.gmra.mrb[48].mxu0 %v3137_v39 }
 0x8bb   :  { %3300 = vmatprep.mubr.bf16.mxu0 %v5077_v60 }
 0x8c2   :  { %3301 = vmatmul.mubr.bf16.gmra.mrb[52].mxu0 %v3138_v0 }
 0x8c3   :  { %3310 = vmatprep.mubr.bf16.mxu0 %v5077_v60 }
 0x965   :  { %v3044_v8 = vpop.f32.mrb[16].mxu0  ;;  %v3085_v36 = vpop.f32.mrb[16].mxu1 }
 0x966   :  { %v3763_v37 = vadd.f32 %v3044_v8, %v4483_v11  ;;  %v3046_v38 = vpop.f32.mrb[17].mxu0  ;;  %v3087_v40 = vpop.f32.mrb[17].mxu1  ;;  %v3765_v60 = vadd.f32 %v3085_v36, %v4502_v28  ;;  %v5100_v28 = vsub.s32 0, %v5099_v54 }
 0x967   :  { %v3764_v41 = vadd.f32 %v3046_v38, %v4487_v12  ;;  %v3048_v42 = vpop.f32.mrb[18].mxu0  ;;  %v3089_v43 = vpop.f32.mrb[18].mxu1  ;;  %v3766_v56 = vadd.f32 %v3087_v40, %v4496_v21 }
 0x968   :  { %v3744_v45 = vmul.f32 -1.442695, %v3763_v37  ;;  %v3049_v46 = vpop.f32.mrb[19].mxu0  ;;  %v3090_v47 = vpop.f32.mrb[19].mxu1  ;;  %v5003_v2 = vrot.slane %v3156_v44, %v5100_v28 }
 0x969   :  { %v3745_v35 = vmul.f32 -1.442695, %v3764_v41  ;;  %v3746_v48 = vmul.f32 -1.442695, %v3766_v56  ;;  %v3359_v37 = vpop.permute.xlu1 %3358 }
 0x96a   :  { %4126 = vpow2.f32 %v3744_v45  ;;  %vm3373_vm3 = vcmp.eq.s32.totalorder %v3359_v37, 1  ;;  %v3362_v45 = vpop.permute.xlu0 %3361 }
 0x96b   :  { %4128 = vpow2.f32 %v3745_v35  ;;  %vm3374_vm4 = vcmp.eq.s32.totalorder %v3362_v45, 1 }
 0x96c   :  { %4130 = vpow2.f32 %v3746_v48 }
 0x96d   :  { %4132 = vtanh.f32 %v3765_v60 }
 0x974   :  { %v4127_v1 = vpop.eup %4126 }
 0x975   :  { %v4129_v7 = vpop.eup %4128  ;;  %v3099_v11 = vadd.f32 1.0, %v4127_v1 }
 0x976   :  { %v3105_v10 = vadd.f32 1.0, %v4129_v7  ;;  %v4131_v12 = vpop.eup %4130 }
 0x977   :  { %4134 = vrcp.f32 %v3099_v11  ;;  %v4133_v58 = vpop.eup %4132  ;;  %v3112_v51 = vadd.f32 1.0, %v4131_v12  ;;  %v3365_v11 = vpop.permute.xlu1 %3364 }
 0x978   :  { %4136 = vrcp.f32 %v3105_v10  ;;  %v3368_v12 = vpop.permute.xlu0 %3367  ;;  %vm3375_vm5 = vcmp.eq.s32.totalorder %v3365_v11, 1 }
 0x979   :  { %4138 = vrcp.f32 %v3112_v51  ;;  %vm3376_vm6 = vcmp.eq.s32.totalorder %v3368_v12, 1 }
 0x981   :  { %v4135_v27 = vpop.eup %4134 }
 0x982   :  { %v4137_v49 = vpop.eup %4136  ;;  %v3116_v21 = vmul.f32 %v4135_v27, %v4133_v58 }
 0x983   :  { %v3115_v53 = vmul.f32 %v4137_v49, %v4987_v16  ;;  %v4139_v57 = vpop.eup %4138 }
 0x985   :  { %v3117_v4 = vadd.f32 %v3116_v21, %v3115_v53  ;;  %v3282_v3 = vpop.f32.mrb[44].mxu0 }
 0x986   :  { %v3283_v25 = vadd.f32 %v3282_v3, %v5003_v2  ;;  %v3284_v24 = vpop.f32.mrb[45].mxu0 }
 0x987   :  { %4140 = vtanh.f32 %v3117_v4  ;;  %v3285_v55 = vadd.f32 %v3284_v24, %v5008_v62  ;;  %v3286_v26 = vpop.f32.mrb[46].mxu0 }
 0x988   :  { %v3377_v59 = vsel %vm3369_vm15, %v3283_v25, 0.0  ;;  %v3287_v16 = vadd.f32 %v3286_v26, %v5003_v2  ;;  %v3288_v17 = vpop.f32.mrb[47].mxu0 }
 0x989   :  { %3393 = vst [vmem:[#allocation12] sm:$0xff] %v3377_v59  ;;  %v3378_v19 = vsel %vm3369_vm15, %v3285_v55, 0.0  ;;  %v3289_v22 = vadd.f32 %v3288_v17, %v5008_v62 }
 0x98a   :  { %3394 = vst [vmem:[#allocation12 + $0x8] sm:$0xff] %v3378_v19  ;;  %v3379_v31 = vsel %vm3370_vm0, %v3287_v16, 0.0 }
 0x98b   :  { %3395 = vst [vmem:[#allocation12 + $0x10] sm:$0xff] %v3379_v31  ;;  %v3380_v32 = vsel %vm3370_vm0, %v3289_v22, 0.0 }
 0x98c   :  { %3396 = vst [vmem:[#allocation12 + $0x18] sm:$0xff] %v3380_v32 }
 0x98d   :  { %v3292_v33 = vpop.f32.mrb[48].mxu0 }
 0x98e   :  { %v3293_v5 = vadd.f32 %v3292_v33, %v5003_v2  ;;  %v3294_v52 = vpop.f32.mrb[49].mxu0 }
 0x98f   :  { %v3295_v63 = vadd.f32 %v3294_v52, %v5008_v62  ;;  %v3296_v9 = vpop.f32.mrb[50].mxu0 }
 0x990   :  { %v3381_v14 = vsel %vm3371_vm1, %v3293_v5, 0.0  ;;  %v3297_v15 = vadd.f32 %v3296_v9, %v5003_v2  ;;  %v3298_v34 = vpop.f32.mrb[51].mxu0 }
 0x991   :  { %v4141_v50 = vpop.eup %4140  ;;  %3397 = vst [vmem:[#allocation12 + $0x20] sm:$0xff] %v3381_v14  ;;  %v3382_v6 = vsel %vm3371_vm1, %v3295_v63, 0.0  ;;  %v3299_v18 = vadd.f32 %v3298_v34, %v5008_v62 }
 0x992   :  { %v3119_v20 = vmul.f32 %v4141_v50, %v4139_v57  ;;  %3398 = vst [vmem:[#allocation12 + $0x28] sm:$0xff] %v3382_v6  ;;  %v3383_v39 = vsel %vm3372_vm2, %v3297_v15, 0.0 }
 0x993   :  { %3399 = vst [vmem:[#allocation12 + $0x30] sm:$0xff] %v3383_v39  ;;  %v3384_v0 = vsel %vm3372_vm2, %v3299_v18, 0.0 }
 0x994   :  { %v3131_v8 = vpack.c.bf16 %v3119_v20, %v3119_v20  ;;  %3400 = vst [vmem:[#allocation12 + $0x38] sm:$0xff] %v3384_v0 }
 0x995   :  { %v3302_v36 = vpop.f32.mrb[52].mxu0 }
 0x996   :  { %v3133_v38 = vrot.slane %v3131_v8, 4  ;;  %v3303_v40 = vadd.f32 %v3302_v36, %v5003_v2  ;;  %v3304_v41 = vpop.f32.mrb[53].mxu0 }
 0x997   :  { %v3305_v42 = vadd.f32 %v3304_v41, %v5008_v62  ;;  %v3306_v43 = vpop.f32.mrb[54].mxu0 }
 0x998   :  { %3135 = vst [vmem:[#allocation3 + $0x18] sm:$0xf0] %v3133_v38  ;;  %v3385_v46 = vsel %vm3373_vm3, %v3303_v40, 0.0  ;;  %v3307_v47 = vadd.f32 %v3306_v43, %v5003_v2  ;;  %v3308_v35 = vpop.f32.mrb[55].mxu0 }
 0x999   :  { %3401 = vst [vmem:[#allocation12 + $0x40] sm:$0xff] %v3385_v46  ;;  %v3386_v56 = vsel %vm3373_vm3, %v3305_v42, 0.0  ;;  %v3309_v48 = vadd.f32 %v3308_v35, %v5008_v62 }
 0x99a   :  { %3402 = vst [vmem:[#allocation12 + $0x48] sm:$0xff] %v3386_v56  ;;  %v3387_v60 = vsel %vm3374_vm4, %v3307_v47, 0.0 }
 0x99b   :  { %3403 = vst [vmem:[#allocation12 + $0x50] sm:$0xff] %v3387_v60  ;;  %v3388_v1 = vsel %vm3374_vm4, %v3309_v48, 0.0 }
 0x99c   :  { %3404 = vst [vmem:[#allocation12 + $0x58] sm:$0xff] %v3388_v1 }
 0x99f   :  { %v3139_v7 = vld [vmem:[#allocation3 + $0x18] sm:$0xff] }
 0x9a0   :  { %3311 = vmatmul.mubr.bf16.gmra.mrb[56].mxu0 %v3139_v7 }
 0xa73   :  { %v3312_v10 = vpop.f32.mrb[56].mxu0 }
 0xa74   :  { %v3313_v44 = vadd.f32 %v3312_v10, %v5003_v2  ;;  %v3314_v58 = vpop.f32.mrb[57].mxu0 }
 0xa75   :  { %v3315_v27 = vadd.f32 %v3314_v58, %v5008_v62  ;;  %v3316_v49 = vpop.f32.mrb[58].mxu0 }
 0xa76   :  { %v3389_v21 = vsel %vm3375_vm5, %v3313_v44, 0.0  ;;  %v3317_v51 = vadd.f32 %v3316_v49, %v5003_v2  ;;  %v3318_v54 = vpop.f32.mrb[59].mxu0 }
 0xa77   :  { %3405 = vst [vmem:[#allocation12 + $0x60] sm:$0xff] %v3389_v21  ;;  %v3390_v28 = vsel %vm3375_vm5, %v3315_v27, 0.0  ;;  %v3319_v53 = vadd.f32 %v3318_v54, %v5008_v62 }
 0xa78   :  { %3406 = vst [vmem:[#allocation12 + $0x68] sm:$0xff] %v3390_v28  ;;  %v3391_v61 = vsel %vm3376_vm6, %v3317_v51, 0.0 }
 0xa79   :  { %3407 = vst [vmem:[#allocation12 + $0x70] sm:$0xff] %v3391_v61  ;;  %v3392_v4 = vsel %vm3376_vm6, %v3319_v53, 0.0 }
 0xa7a   :  { %3408 = vst [vmem:[#allocation12 + $0x78] sm:$0xff] %v3392_v4 }
 0xa7b   :  { %4219 = shalt.err (!%p4216_p0)
}
 0xa7c   :  { %s4220_s24 = scalar_lea.hbm %s5048_s7, 2048 }
 0xa7d   :  { %p4221_p1 = scmp.ne.s32.totalorder %s5048_s7, %s4220_s24  ;;  %p4224_p2 = scmp.lt.u32.totalorder %s4220_s24, %s5048_s7 }
 0xa7f   :  { %p4226_p3 = pnand %p4224_p2, %p4221_p1 }
 0xa81   :  { %4229 = shalt.err (!%p4226_p3)
}
 0xa82   :  { %3420 = dma.vmem_to_hbm [thread:$0]  %s3415_s20, 2048, %s5048_s7, [#allocation8], %s4238_s13, %s4238_s13, %s4239_s14  }
 0xa83   :  { %4234 = dma.done.wait [#allocation8], 2048  }
 0xa84   :  { %4235 = vsyncadd [#allocation8], 4294965248 }
 0xa85   :  { %3424 = vsyncpa [#allocation7], 1 }
 0xa86   :  { %3425 = vsyncpa [#allocation10], 1 }
 0xa87   :  { %3426 = vsyncpa [#allocation8], 1 }

</bundles_post_ra>
